<compile_context>
chip_gen: v5e
topology: v5e:2x2
jax: 0.10.0
libtpu: 0.0.40
codegen_flags: <defaults>
</compile_context>

<pallas_src>
import jax
import jax.numpy as jnp
from jax.experimental import pallas as pl
from jax.experimental.pallas import tpu as pltpu


# ---------------------------------------------------------------------------
# In-kernel helpers
# ---------------------------------------------------------------------------

def _stage(pad_ref, img, c, HW, PAD):
    """Zero the halo columns of `pad_ref` and place `img` (c, HW) at column PAD."""
    zeros = jnp.zeros((pad_ref.shape[0], PAD), pad_ref.dtype)
    pad_ref[:, 0:PAD] = zeros
    pad_ref[:, PAD + HW:PAD + HW + PAD] = zeros
    pad_ref[0:c, PAD:PAD + HW] = img.astype(pad_ref.dtype)


def _tap_conv(pad_ref, w_ref, c_in, c_out, W, HW, PAD):
    """3x3 'same' conv on a (c_in, HW) image staged in `pad_ref` (f32, zero halo).

    pad_ref : VMEM ref (>= c_in, PAD + HW + PAD) f32; columns [PAD, PAD+HW) hold
              the image flattened row-major (lane q = h*W + w), halo is zero.
    w_ref   : (9, c_out, c_in) bf16, tap-major (t = kh*3 + kw).
    Returns a (c_out, HW) f32 accumulator.

    Row out-of-range taps read the zero halo; column wrap-around is killed by a
    per-dw lane mask, so no gather / roll / reshape is needed.
    """
    col = jax.lax.broadcasted_iota(jnp.int32, (1, HW), 1) % W
    ok = {-1: col >= 1, 0: None, 1: col <= W - 2}
    acc = jnp.zeros((c_out, HW), jnp.float32)
    t = 0
    for dh in (-1, 0, 1):
        for dw in (-1, 0, 1):
            s = dh * W + dw
            tap = pad_ref[0:c_in, PAD + s:PAD + s + HW]            # f32 shifted view
            if ok[dw] is not None:
                tap = jnp.where(ok[dw], tap, jnp.zeros_like(tap))  # kill column wrap
            acc = acc + jnp.dot(w_ref[t], tap.astype(jnp.bfloat16),
                                preferred_element_type=jnp.float32)
            t += 1
    return acc


# ---------------------------------------------------------------------------
# Kernels
# ---------------------------------------------------------------------------

def _make_fused_kernel(cin, cout, W, HW, PAD, diff):
    """conv1 + bias + bn1 + relu + conv2 + bn2 + skip-add + relu, one image/step."""

    def kernel(x_ref, w1_ref, w2_ref, p_ref, o_ref, pad_ref):
        pv = p_ref[...]
        b1, s1, t1, s2, t2 = (pv[:, i:i + 1] for i in range(5))

        # conv1 + bias + bn1 + relu  (z1 doubles as the shared-weight skip path)
        _stage(pad_ref, x_ref[0], cin, HW, PAD)
        z1 = _tap_conv(pad_ref, w1_ref, cin, cout, W, HW, PAD) + b1
        a1 = jnp.maximum(z1 * s1 + t1, 0.0)

        # conv2 (+ bias folded into t2) + bn2 + skip add + relu
        _stage(pad_ref, a1, cout, HW, PAD)
        y = _tap_conv(pad_ref, w2_ref, cout, cout, W, HW, PAD) * s2 + t2
        skip = z1 if diff else x_ref[0].astype(jnp.float32)
        o_ref[0] = jnp.maximum(y + skip, 0.0).astype(o_ref.dtype)

    return kernel


def _make_conv1_kernel(cin, cout, W, HW, PAD, emit_skip):
    """Fallback kernel A: a1 = relu(bn1(conv1(x) + b1)) [, skip = conv1(x) + b1]."""

    def kernel(*refs):
        if emit_skip:
            x_ref, w1_ref, p_ref, a_ref, skip_ref, pad_ref = refs
        else:
            x_ref, w1_ref, p_ref, a_ref, pad_ref = refs
        pv = p_ref[...]
        b1, s1, t1 = pv[:, 0:1], pv[:, 1:2], pv[:, 2:3]
        _stage(pad_ref, x_ref[0], cin, HW, PAD)
        z1 = _tap_conv(pad_ref, w1_ref, cin, cout, W, HW, PAD) + b1
        a_ref[0] = jnp.maximum(z1 * s1 + t1, 0.0).astype(a_ref.dtype)
        if emit_skip:
            skip_ref[0] = z1.astype(skip_ref.dtype)

    return kernel


def _make_conv2_kernel(cout, W, HW, PAD):
    """Fallback kernel B: out = relu(bn2(conv2(a1) + b2) + skip)."""

    def kernel(a_ref, skip_ref, w2_ref, p_ref, o_ref, pad_ref):
        pv = p_ref[...]
        s2, t2 = pv[:, 3:4], pv[:, 4:5]
        _stage(pad_ref, a_ref[0], cout, HW, PAD)
        y = _tap_conv(pad_ref, w2_ref, cout, cout, W, HW, PAD) * s2 + t2
        o_ref[0] = jnp.maximum(y + skip_ref[0].astype(jnp.float32),
                               0.0).astype(o_ref.dtype)

    return kernel


# ---------------------------------------------------------------------------
# VMEM sizing (generation-aware: conservative for v7x's 64 MiB / 32 MiB scoped)
# ---------------------------------------------------------------------------

_FUSE_BUDGET_BYTES = 24 << 20   # per-image fused footprint gate (v7x-safe)


def _vmem_bytes_fused(cin, cout, HW, PAD):
    cmax = max(cin, cout)
    blocks = 2 * (cin + cout) * HW * 4                     # double-buffered x / out
    weights = 2 * (9 * cout * (cin + cout) * 2 + cout * 8 * 4)
    scratch = cmax * (PAD + HW + PAD) * 4                  # f32 halo scratch
    live = 2 * cout * HW * 4                               # z1 + conv accumulator
    return blocks + weights + scratch + live


def _vmem_limit(est_bytes):
    # floor at every generation's default scoped limit, cap under v7x physical.
    return int(min(max(4 * est_bytes, 16 << 20), 56 << 20))


# ---------------------------------------------------------------------------
# pallas_call wrappers
# ---------------------------------------------------------------------------

def _fused_forward(x_flat, w1f, w2f, pvec, cin, cout, W, HW, PAD, diff, vmem_limit):
    N = x_flat.shape[0]
    cmax = max(cin, cout)
    img = lambda n: (n, 0, 0)
    return pl.pallas_call(
        _make_fused_kernel(cin, cout, W, HW, PAD, diff),
        out_shape=jax.ShapeDtypeStruct((N, cout, HW), jnp.float32),
        grid_spec=pltpu.PrefetchScalarGridSpec(
            num_scalar_prefetch=0,
            grid=(N,),
            in_specs=[
                pl.BlockSpec((1, cin, HW), img),
                pl.BlockSpec((9, cout, cin), lambda n: (0, 0, 0)),
                pl.BlockSpec((9, cout, cout), lambda n: (0, 0, 0)),
                pl.BlockSpec((cout, 8), lambda n: (0, 0)),
            ],
            out_specs=pl.BlockSpec((1, cout, HW), img),
            scratch_shapes=[pltpu.VMEM((cmax, PAD + HW + PAD), jnp.float32)]),
        compiler_params=pltpu.CompilerParams(
            dimension_semantics=("parallel",),
            vmem_limit_bytes=vmem_limit),
    )(x_flat, w1f, w2f, pvec)


def _unfused_forward(x_flat, w1f, w2f, pvec, cin, cout, W, HW, PAD, diff, vmem_limit):
    """Fallback for images whose fused footprint exceeds the VMEM budget:
    a1 (and, when Cin != Cout, the skip) round-trip HBM in bf16."""
    # TODO(synk): strip-level (halo-row) tiling for images too large for even a
    # single whole-image conv block in VMEM.
    N = x_flat.shape[0]
    cparams = pltpu.CompilerParams(dimension_semantics=("parallel",),
                                   vmem_limit_bytes=vmem_limit)
    img = lambda n: (n, 0, 0)
    const3 = lambda n: (0, 0, 0)
    const2 = lambda n: (0, 0)

    out_shapes1 = [jax.ShapeDtypeStruct((N, cout, HW), jnp.bfloat16)]
    out_specs1 = [pl.BlockSpec((1, cout, HW), img)]
    if diff:   # skip = z1 only needed when Cin != Cout
        out_shapes1.append(jax.ShapeDtypeStruct((N, cout, HW), jnp.bfloat16))
        out_specs1.append(pl.BlockSpec((1, cout, HW), img))

    res1 = pl.pallas_call(
        _make_conv1_kernel(cin, cout, W, HW, PAD, diff),
        out_shape=tuple(out_shapes1),
        grid_spec=pltpu.PrefetchScalarGridSpec(
            num_scalar_prefetch=0,
            grid=(N,),
            in_specs=[pl.BlockSpec((1, cin, HW), img),
                      pl.BlockSpec((9, cout, cin), const3),
                      pl.BlockSpec((cout, 8), const2)],
            out_specs=tuple(out_specs1),
            scratch_shapes=[pltpu.VMEM((cin, PAD + HW + PAD), jnp.float32)]),
        compiler_params=cparams,
    )(x_flat, w1f, pvec)
    a1 = res1[0]
    skip = res1[1] if diff else x_flat   # Cin == Cout -> skip is x itself

    out = pl.pallas_call(
        _make_conv2_kernel(cout, W, HW, PAD),
        out_shape=jax.ShapeDtypeStruct((N, cout, HW), jnp.float32),
        grid_spec=pltpu.PrefetchScalarGridSpec(
            num_scalar_prefetch=0,
            grid=(N,),
            in_specs=[pl.BlockSpec((1, cout, HW), img),
                      pl.BlockSpec((1, cout, HW), img),
                      pl.BlockSpec((9, cout, cout), const3),
                      pl.BlockSpec((cout, 8), const2)],
            out_specs=pl.BlockSpec((1, cout, HW), img),
            scratch_shapes=[pltpu.VMEM((cout, PAD + HW + PAD), jnp.float32)]),
        compiler_params=cparams,
    )(a1, skip, w2f, pvec)
    return out


# ---------------------------------------------------------------------------
# Forward pass
# ---------------------------------------------------------------------------

def residual_block_forward(x, params):
    """ResidualBlock.forward for stride == 1, eval-mode BatchNorm.

    x: (N, Cin, H, W) f32 -> (N, Cout, H, W) f32.
    """
    # TODO(synk): stride > 1 (downsampling) branch of ResidualBlock is not implemented.
    # TODO(synk): BatchNorm uses eval-mode running stats folded to a per-channel affine;
    #             training-mode batch statistics are not computed in-kernel.
    N, cin, H, W = x.shape
    w1, b1 = params["conv1_w"], params["conv1_b"]
    w2, b2 = params["conv2_w"], params["conv2_b"]
    cout = w1.shape[0]
    diff = cin != cout
    HW = H * W
    PAD = max(128, -(-(W + 1) // 128) * 128)   # halo width: >= W+1, 128-aligned

    def bn_affine(g, beta, m, v, eps=1e-5):
        s = g / jnp.sqrt(v + eps)
        return s, beta - m * s

    s1, t1 = bn_affine(params["bn1_gamma"], params["bn1_beta"],
                       params["bn1_mean"], params["bn1_var"])
    s2, t2 = bn_affine(params["bn2_gamma"], params["bn2_beta"],
                       params["bn2_mean"], params["bn2_var"])
    t2f = b2 * s2 + t2                          # fold conv2 bias into bn2 shift

    # Tap-major weight layout (t = kh*3 + kw) and packed per-channel params.
    w1f = jnp.transpose(w1, (2, 3, 0, 1)).reshape(9, cout, cin).astype(jnp.bfloat16)
    w2f = jnp.transpose(w2, (2, 3, 0, 1)).reshape(9, cout, cout).astype(jnp.bfloat16)
    zc = jnp.zeros_like(b1)
    pvec = jnp.stack([b1, s1, t1, s2, t2f, zc, zc, zc], axis=1).astype(jnp.float32)

    x_flat = x.reshape(N, cin, HW).astype(jnp.float32)

    est = _vmem_bytes_fused(cin, cout, HW, PAD)
    if est <= _FUSE_BUDGET_BYTES:
        out = _fused_forward(x_flat, w1f, w2f, pvec, cin, cout, W, HW, PAD, diff,
                             _vmem_limit(est))
    else:
        out = _unfused_forward(x_flat, w1f, w2f, pvec, cin, cout, W, HW, PAD, diff,
                               _vmem_limit(est))
    return out.reshape(N, cout, H, W)


# ---------------------------------------------------------------------------
# Pure-JAX reference (mirrors bf16 conv inputs / f32 accumulation)
# ---------------------------------------------------------------------------

def _reference(x, params):
    def conv3x3(xa, w, b):
        y = jax.lax.conv_general_dilated(
            xa.astype(jnp.bfloat16), w.astype(jnp.bfloat16),
            window_strides=(1, 1), padding="SAME",
            dimension_numbers=("NCHW", "OIHW", "NCHW"),
            preferred_element_type=jnp.float32)
        return y + b.reshape(1, -1, 1, 1)

    def bn(y, g, beta, m, v, eps=1e-5):
        s = g / jnp.sqrt(v + eps)
        return y * s.reshape(1, -1, 1, 1) + (beta - m * s).reshape(1, -1, 1, 1)

    z1 = conv3x3(x, params["conv1_w"], params["conv1_b"])
    a1 = jax.nn.relu(bn(z1, params["bn1_gamma"], params["bn1_beta"],
                        params["bn1_mean"], params["bn1_var"]))
    z2 = conv3x3(a1, params["conv2_w"], params["conv2_b"])
    y = bn(z2, params["bn2_gamma"], params["bn2_beta"],
           params["bn2_mean"], params["bn2_var"])
    skip = z1 if x.shape[1] != params["conv1_w"].shape[0] else x
    return jax.nn.relu(y + skip)


if __name__ == "__main__":
    key = jax.random.PRNGKey(0)
    keys = jax.random.split(key, 12)

    N, Cin, Cout, H, W = 2, 8, 16, 16, 16   # Cin != Cout -> exercises ResidualConv skip
    KH = KW = 3

    x = jax.random.normal(keys[0], (N, Cin, H, W), dtype=jnp.float32)

    def conv_init(kw_, kb_, c_in, c_out):
        fan_in = c_in * KH * KW
        bound = 1.0 / (fan_in ** 0.5)
        w = jax.random.uniform(kw_, (c_out, c_in, KH, KW),
                               minval=-bound, maxval=bound, dtype=jnp.float32)
        b = jax.random.uniform(kb_, (c_out,), minval=-bound, maxval=bound,
                               dtype=jnp.float32)
        return w, b

    w1, b1 = conv_init(keys[1], keys[2], Cin, Cout)
    w2, b2 = conv_init(keys[3], keys[4], Cout, Cout)

    params = dict(
        conv1_w=w1, conv1_b=b1, conv2_w=w2, conv2_b=b2,
        bn1_gamma=1.0 + 0.1 * jax.random.normal(keys[5], (Cout,), jnp.float32),
        bn1_beta=0.1 * jax.random.normal(keys[6], (Cout,), jnp.float32),
        bn1_mean=0.1 * jax.random.normal(keys[7], (Cout,), jnp.float32),
        bn1_var=jnp.abs(1.0 + 0.1 * jax.random.normal(keys[8], (Cout,), jnp.float32)),
        bn2_gamma=1.0 + 0.1 * jax.random.normal(keys[9], (Cout,), jnp.float32),
        bn2_beta=0.1 * jax.random.normal(keys[10], (Cout,), jnp.float32),
        bn2_mean=0.1 * jax.random.normal(keys[11], (Cout,), jnp.float32),
        bn2_var=jnp.ones((Cout,), jnp.float32),
    )

    out = residual_block_forward(x, params)
    out = jax.block_until_ready(out)

    ref = _reference(x, params)
    assert out.shape == (N, Cout, H, W)
    max_err = float(jnp.max(jnp.abs(out - ref)))
    assert jnp.allclose(out, ref, atol=1e-2, rtol=1e-2), max_err

    print("KERNEL_OK")
</pallas_src>

<mosaic_0001>
module attributes {stable_mosaic.version = 11 : i64} {
  func.func @kernel(%arg0: i32, %arg1: memref<1x8x256xf32, #tpu.memory_space<vmem>>, %arg2: memref<9x16x8xbf16, #tpu.memory_space<vmem>>, %arg3: memref<9x16x16xbf16, #tpu.memory_space<vmem>>, %arg4: memref<16x8xf32, #tpu.memory_space<vmem>>, %arg5: memref<1x16x256xf32, #tpu.memory_space<vmem>>, %arg6: memref<16x512xf32, #tpu.memory_space<vmem>>) attributes {dimension_semantics = [#tpu.dimension_semantics<parallel>], iteration_bounds = array<i64: 2>, scalar_prefetch = 0 : i64, scratch_operands = 1 : i64, tpu.core_type = #tpu.core_type<tc>, window_params = [{transform_indices = @transform_0, window_bounds = array<i64: 1, 8, 256>}, {pipeline_mode = #tpu.pipeline_mode<synchronous>, transform_indices = @transform_1, window_bounds = array<i64: 9, 16, 8>}, {pipeline_mode = #tpu.pipeline_mode<synchronous>, transform_indices = @transform_2, window_bounds = array<i64: 9, 16, 16>}, {pipeline_mode = #tpu.pipeline_mode<synchronous>, transform_indices = @transform_3, window_bounds = array<i64: 16, 8>}, {transform_indices = @transform_4, window_bounds = array<i64: 1, 16, 256>}]} {
    %c0 = arith.constant 0 : index
    %c0_0 = arith.constant 0 : index
    %0 = vector.load %arg4[%c0, %c0_0] : memref<16x8xf32, #tpu.memory_space<vmem>>, vector<16x8xf32>
    %1 = vector.extract_strided_slice %0 {offsets = [0, 0], sizes = [16, 1], strides = [1, 1]} : vector<16x8xf32> to vector<16x1xf32>
    %2 = vector.extract_strided_slice %0 {offsets = [0, 1], sizes = [16, 1], strides = [1, 1]} : vector<16x8xf32> to vector<16x1xf32>
    %3 = vector.extract_strided_slice %0 {offsets = [0, 2], sizes = [16, 1], strides = [1, 1]} : vector<16x8xf32> to vector<16x1xf32>
    %4 = vector.extract_strided_slice %0 {offsets = [0, 3], sizes = [16, 1], strides = [1, 1]} : vector<16x8xf32> to vector<16x1xf32>
    %5 = vector.extract_strided_slice %0 {offsets = [0, 4], sizes = [16, 1], strides = [1, 1]} : vector<16x8xf32> to vector<16x1xf32>
    %c0_1 = arith.constant 0 : index
    %c0_2 = arith.constant 0 : index
    %c0_3 = arith.constant 0 : index
    %6 = vector.load %arg1[%c0_1, %c0_2, %c0_3] : memref<1x8x256xf32, #tpu.memory_space<vmem>>, vector<1x8x256xf32>
    %7 = vector.shape_cast %6 : vector<1x8x256xf32> to vector<8x256xf32>
    %cst = arith.constant 0.000000e+00 : f32
    %8 = vector.broadcast %cst : f32 to vector<16x128xf32>
    %c0_4 = arith.constant 0 : index
    %c0_5 = arith.constant 0 : index
    %9 = vector.load %arg6[%c0_4, %c0_5] : memref<16x512xf32, #tpu.memory_space<vmem>>, vector<16x128xf32>
    tpu.vector_store %arg6[%c0_4, %c0_5], %8 {strides = array<i32>} : memref<16x512xf32, #tpu.memory_space<vmem>>, vector<16x128xf32>,
    %c0_6 = arith.constant 0 : index
    %c384 = arith.constant 384 : index
    %10 = vector.load %arg6[%c0_6, %c384] : memref<16x512xf32, #tpu.memory_space<vmem>>, vector<16x128xf32>
    tpu.vector_store %arg6[%c0_6, %c384], %8 {strides = array<i32>} : memref<16x512xf32, #tpu.memory_space<vmem>>, vector<16x128xf32>,
    %c0_7 = arith.constant 0 : index
    %c128 = arith.constant 128 : index
    %11 = vector.load %arg6[%c0_7, %c128] : memref<16x512xf32, #tpu.memory_space<vmem>>, vector<8x256xf32>
    tpu.vector_store %arg6[%c0_7, %c128], %7 {strides = array<i32>} : memref<16x512xf32, #tpu.memory_space<vmem>>, vector<8x256xf32>,
    %12 = tpu.iota {dimensions = array<i32: 1>} : vector<1x256xi32>
    %c16_i32 = arith.constant 16 : i32
    %c0_i32 = arith.constant 0 : i32
    %13 = arith.cmpi eq, %c16_i32, %c0_i32 : i32
    %c1_i32 = arith.constant 1 : i32
    %14 = arith.select %13, %c1_i32, %c16_i32 : i32
    %15 = vector.broadcast %14 : i32 to vector<1x256xi32>
    %16 = arith.remsi %12, %15 : vector<1x256xi32>
    %c0_i32_8 = arith.constant 0 : i32
    %17 = vector.broadcast %c0_i32_8 : i32 to vector<1x256xi32>
    %18 = arith.cmpi ne, %16, %17 : vector<1x256xi32>
    %c0_i32_9 = arith.constant 0 : i32
    %19 = vector.broadcast %c0_i32_9 : i32 to vector<1x256xi32>
    %20 = arith.cmpi slt, %16, %19 : vector<1x256xi32>
    %c0_i32_10 = arith.constant 0 : i32
    %21 = arith.cmpi slt, %14, %c0_i32_10 : i32
    %22 = vector.broadcast %21 : i1 to vector<1x256xi1>
    %23 = vector.broadcast %22 : vector<1x256xi1> to vector<1x256xi1>
    %24 = arith.xori %20, %23 : vector<1x256xi1>
    %25 = arith.andi %24, %18 : vector<1x256xi1>
    %26 = vector.broadcast %14 : i32 to vector<1x256xi32>
    %27 = arith.addi %16, %26 : vector<1x256xi32>
    %28 = arith.select %25, %27, %16 : vector<1x256xi1>, vector<1x256xi32>
    %c1_i32_11 = arith.constant 1 : i32
    %29 = vector.broadcast %c1_i32_11 : i32 to vector<1x256xi32>
    %30 = arith.cmpi sge, %28, %29 : vector<1x256xi32>
    %c14_i32 = arith.constant 14 : i32
    %31 = vector.broadcast %c14_i32 : i32 to vector<1x256xi32>
    %32 = arith.cmpi sle, %28, %31 : vector<1x256xi32>
    %cst_12 = arith.constant 0.000000e+00 : f32
    %33 = vector.broadcast %cst_12 : f32 to vector<16x256xf32>
    %c0_13 = arith.constant 0 : index
    %c111 = arith.constant 111 : index
    %34 = vector.load %arg6[%c0_13, %c111] : memref<16x512xf32, #tpu.memory_space<vmem>>, vector<8x256xf32>
    %cst_14 = arith.constant 0.000000e+00 : f32
    %35 = vector.broadcast %cst_14 : f32 to vector<8x256xf32>
    %36 = vector.shape_cast %30 : vector<1x256xi1> to vector<1x256xi1>
    %37 = vector.broadcast %36 : vector<1x256xi1> to vector<8x256xi1>
    %38 = arith.select %37, %34, %35 : vector<8x256xi1>, vector<8x256xf32>
    %c0_15 = arith.constant 0 : index
    %c0_16 = arith.constant 0 : index
    %c0_17 = arith.constant 0 : index
    %39 = vector.load %arg2[%c0_15, %c0_16, %c0_17] : memref<9x16x8xbf16, #tpu.memory_space<vmem>>, vector<1x16x8xbf16>
    %40 = vector.shape_cast %39 : vector<1x16x8xbf16> to vector<16x8xbf16>
    %41 = arith.truncf %38 : vector<8x256xf32> to vector<8x256xbf16>
    %cst_18 = arith.constant dense<0.000000e+00> : vector<16x256xf32>
    %42 = tpu.matmul %40, %41, %cst_18 {dimension_numbers = #tpu.dot_dimension_numbers<[1], [0], [0], [1], [0, 0, 1, 1], [], []>} : vector<16x8xbf16>, vector<8x256xbf16>, vector<16x256xf32> -> vector<16x256xf32>
    %43 = arith.addf %33, %42 : vector<16x256xf32>
    %c0_19 = arith.constant 0 : index
    %c112 = arith.constant 112 : index
    %44 = vector.load %arg6[%c0_19, %c112] : memref<16x512xf32, #tpu.memory_space<vmem>>, vector<8x256xf32>
    %c1 = arith.constant 1 : index
    %c0_20 = arith.constant 0 : index
    %c0_21 = arith.constant 0 : index
    %45 = vector.load %arg2[%c1, %c0_20, %c0_21] : memref<9x16x8xbf16, #tpu.memory_space<vmem>>, vector<1x16x8xbf16>
    %46 = vector.shape_cast %45 : vector<1x16x8xbf16> to vector<16x8xbf16>
    %47 = arith.truncf %44 : vector<8x256xf32> to vector<8x256xbf16>
    %cst_22 = arith.constant dense<0.000000e+00> : vector<16x256xf32>
    %48 = tpu.matmul %46, %47, %cst_22 {dimension_numbers = #tpu.dot_dimension_numbers<[1], [0], [0], [1], [0, 0, 1, 1], [], []>} : vector<16x8xbf16>, vector<8x256xbf16>, vector<16x256xf32> -> vector<16x256xf32>
    %49 = arith.addf %43, %48 : vector<16x256xf32>
    %c0_23 = arith.constant 0 : index
    %c113 = arith.constant 113 : index
    %50 = vector.load %arg6[%c0_23, %c113] : memref<16x512xf32, #tpu.memory_space<vmem>>, vector<8x256xf32>
    %cst_24 = arith.constant 0.000000e+00 : f32
    %51 = vector.broadcast %cst_24 : f32 to vector<8x256xf32>
    %52 = vector.shape_cast %32 : vector<1x256xi1> to vector<1x256xi1>
    %53 = vector.broadcast %52 : vector<1x256xi1> to vector<8x256xi1>
    %54 = arith.select %53, %50, %51 : vector<8x256xi1>, vector<8x256xf32>
    %c2 = arith.constant 2 : index
    %c0_25 = arith.constant 0 : index
    %c0_26 = arith.constant 0 : index
    %55 = vector.load %arg2[%c2, %c0_25, %c0_26] : memref<9x16x8xbf16, #tpu.memory_space<vmem>>, vector<1x16x8xbf16>
    %56 = vector.shape_cast %55 : vector<1x16x8xbf16> to vector<16x8xbf16>
    %57 = arith.truncf %54 : vector<8x256xf32> to vector<8x256xbf16>
    %cst_27 = arith.constant dense<0.000000e+00> : vector<16x256xf32>
    %58 = tpu.matmul %56, %57, %cst_27 {dimension_numbers = #tpu.dot_dimension_numbers<[1], [0], [0], [1], [0, 0, 1, 1], [], []>} : vector<16x8xbf16>, vector<8x256xbf16>, vector<16x256xf32> -> vector<16x256xf32>
    %59 = arith.addf %49, %58 : vector<16x256xf32>
    %c0_28 = arith.constant 0 : index
    %c127 = arith.constant 127 : index
    %60 = vector.load %arg6[%c0_28, %c127] : memref<16x512xf32, #tpu.memory_space<vmem>>, vector<8x256xf32>
    %cst_29 = arith.constant 0.000000e+00 : f32
    %61 = vector.broadcast %cst_29 : f32 to vector<8x256xf32>
    %62 = vector.shape_cast %30 : vector<1x256xi1> to vector<1x256xi1>
    %63 = vector.broadcast %62 : vector<1x256xi1> to vector<8x256xi1>
    %64 = arith.select %63, %60, %61 : vector<8x256xi1>, vector<8x256xf32>
    %c3 = arith.constant 3 : index
    %c0_30 = arith.constant 0 : index
    %c0_31 = arith.constant 0 : index
    %65 = vector.load %arg2[%c3, %c0_30, %c0_31] : memref<9x16x8xbf16, #tpu.memory_space<vmem>>, vector<1x16x8xbf16>
    %66 = vector.shape_cast %65 : vector<1x16x8xbf16> to vector<16x8xbf16>
    %67 = arith.truncf %64 : vector<8x256xf32> to vector<8x256xbf16>
    %cst_32 = arith.constant dense<0.000000e+00> : vector<16x256xf32>
    %68 = tpu.matmul %66, %67, %cst_32 {dimension_numbers = #tpu.dot_dimension_numbers<[1], [0], [0], [1], [0, 0, 1, 1], [], []>} : vector<16x8xbf16>, vector<8x256xbf16>, vector<16x256xf32> -> vector<16x256xf32>
    %69 = arith.addf %59, %68 : vector<16x256xf32>
    %c0_33 = arith.constant 0 : index
    %c128_34 = arith.constant 128 : index
    %70 = vector.load %arg6[%c0_33, %c128_34] : memref<16x512xf32, #tpu.memory_space<vmem>>, vector<8x256xf32>
    %c4 = arith.constant 4 : index
    %c0_35 = arith.constant 0 : index
    %c0_36 = arith.constant 0 : index
    %71 = vector.load %arg2[%c4, %c0_35, %c0_36] : memref<9x16x8xbf16, #tpu.memory_space<vmem>>, vector<1x16x8xbf16>
    %72 = vector.shape_cast %71 : vector<1x16x8xbf16> to vector<16x8xbf16>
    %73 = arith.truncf %70 : vector<8x256xf32> to vector<8x256xbf16>
    %cst_37 = arith.constant dense<0.000000e+00> : vector<16x256xf32>
    %74 = tpu.matmul %72, %73, %cst_37 {dimension_numbers = #tpu.dot_dimension_numbers<[1], [0], [0], [1], [0, 0, 1, 1], [], []>} : vector<16x8xbf16>, vector<8x256xbf16>, vector<16x256xf32> -> vector<16x256xf32>
    %75 = arith.addf %69, %74 : vector<16x256xf32>
    %c0_38 = arith.constant 0 : index
    %c129 = arith.constant 129 : index
    %76 = vector.load %arg6[%c0_38, %c129] : memref<16x512xf32, #tpu.memory_space<vmem>>, vector<8x256xf32>
    %cst_39 = arith.constant 0.000000e+00 : f32
    %77 = vector.broadcast %cst_39 : f32 to vector<8x256xf32>
    %78 = vector.shape_cast %32 : vector<1x256xi1> to vector<1x256xi1>
    %79 = vector.broadcast %78 : vector<1x256xi1> to vector<8x256xi1>
    %80 = arith.select %79, %76, %77 : vector<8x256xi1>, vector<8x256xf32>
    %c5 = arith.constant 5 : index
    %c0_40 = arith.constant 0 : index
    %c0_41 = arith.constant 0 : index
    %81 = vector.load %arg2[%c5, %c0_40, %c0_41] : memref<9x16x8xbf16, #tpu.memory_space<vmem>>, vector<1x16x8xbf16>
    %82 = vector.shape_cast %81 : vector<1x16x8xbf16> to vector<16x8xbf16>
    %83 = arith.truncf %80 : vector<8x256xf32> to vector<8x256xbf16>
    %cst_42 = arith.constant dense<0.000000e+00> : vector<16x256xf32>
    %84 = tpu.matmul %82, %83, %cst_42 {dimension_numbers = #tpu.dot_dimension_numbers<[1], [0], [0], [1], [0, 0, 1, 1], [], []>} : vector<16x8xbf16>, vector<8x256xbf16>, vector<16x256xf32> -> vector<16x256xf32>
    %85 = arith.addf %75, %84 : vector<16x256xf32>
    %c0_43 = arith.constant 0 : index
    %c143 = arith.constant 143 : index
    %86 = vector.load %arg6[%c0_43, %c143] : memref<16x512xf32, #tpu.memory_space<vmem>>, vector<8x256xf32>
    %cst_44 = arith.constant 0.000000e+00 : f32
    %87 = vector.broadcast %cst_44 : f32 to vector<8x256xf32>
    %88 = vector.shape_cast %30 : vector<1x256xi1> to vector<1x256xi1>
    %89 = vector.broadcast %88 : vector<1x256xi1> to vector<8x256xi1>
    %90 = arith.select %89, %86, %87 : vector<8x256xi1>, vector<8x256xf32>
    %c6 = arith.constant 6 : index
    %c0_45 = arith.constant 0 : index
    %c0_46 = arith.constant 0 : index
    %91 = vector.load %arg2[%c6, %c0_45, %c0_46] : memref<9x16x8xbf16, #tpu.memory_space<vmem>>, vector<1x16x8xbf16>
    %92 = vector.shape_cast %91 : vector<1x16x8xbf16> to vector<16x8xbf16>
    %93 = arith.truncf %90 : vector<8x256xf32> to vector<8x256xbf16>
    %cst_47 = arith.constant dense<0.000000e+00> : vector<16x256xf32>
    %94 = tpu.matmul %92, %93, %cst_47 {dimension_numbers = #tpu.dot_dimension_numbers<[1], [0], [0], [1], [0, 0, 1, 1], [], []>} : vector<16x8xbf16>, vector<8x256xbf16>, vector<16x256xf32> -> vector<16x256xf32>
    %95 = arith.addf %85, %94 : vector<16x256xf32>
    %c0_48 = arith.constant 0 : index
    %c144 = arith.constant 144 : index
    %96 = vector.load %arg6[%c0_48, %c144] : memref<16x512xf32, #tpu.memory_space<vmem>>, vector<8x256xf32>
    %c7 = arith.constant 7 : index
    %c0_49 = arith.constant 0 : index
    %c0_50 = arith.constant 0 : index
    %97 = vector.load %arg2[%c7, %c0_49, %c0_50] : memref<9x16x8xbf16, #tpu.memory_space<vmem>>, vector<1x16x8xbf16>
    %98 = vector.shape_cast %97 : vector<1x16x8xbf16> to vector<16x8xbf16>
    %99 = arith.truncf %96 : vector<8x256xf32> to vector<8x256xbf16>
    %cst_51 = arith.constant dense<0.000000e+00> : vector<16x256xf32>
    %100 = tpu.matmul %98, %99, %cst_51 {dimension_numbers = #tpu.dot_dimension_numbers<[1], [0], [0], [1], [0, 0, 1, 1], [], []>} : vector<16x8xbf16>, vector<8x256xbf16>, vector<16x256xf32> -> vector<16x256xf32>
    %101 = arith.addf %95, %100 : vector<16x256xf32>
    %c0_52 = arith.constant 0 : index
    %c145 = arith.constant 145 : index
    %102 = vector.load %arg6[%c0_52, %c145] : memref<16x512xf32, #tpu.memory_space<vmem>>, vector<8x256xf32>
    %cst_53 = arith.constant 0.000000e+00 : f32
    %103 = vector.broadcast %cst_53 : f32 to vector<8x256xf32>
    %104 = vector.shape_cast %32 : vector<1x256xi1> to vector<1x256xi1>
    %105 = vector.broadcast %104 : vector<1x256xi1> to vector<8x256xi1>
    %106 = arith.select %105, %102, %103 : vector<8x256xi1>, vector<8x256xf32>
    %c8 = arith.constant 8 : index
    %c0_54 = arith.constant 0 : index
    %c0_55 = arith.constant 0 : index
    %107 = vector.load %arg2[%c8, %c0_54, %c0_55] : memref<9x16x8xbf16, #tpu.memory_space<vmem>>, vector<1x16x8xbf16>
    %108 = vector.shape_cast %107 : vector<1x16x8xbf16> to vector<16x8xbf16>
    %109 = arith.truncf %106 : vector<8x256xf32> to vector<8x256xbf16>
    %cst_56 = arith.constant dense<0.000000e+00> : vector<16x256xf32>
    %110 = tpu.matmul %108, %109, %cst_56 {dimension_numbers = #tpu.dot_dimension_numbers<[1], [0], [0], [1], [0, 0, 1, 1], [], []>} : vector<16x8xbf16>, vector<8x256xbf16>, vector<16x256xf32> -> vector<16x256xf32>
    %111 = arith.addf %101, %110 : vector<16x256xf32>
    %112 = vector.broadcast %1 : vector<16x1xf32> to vector<16x256xf32>
    %113 = arith.addf %111, %112 : vector<16x256xf32>
    %114 = vector.broadcast %2 : vector<16x1xf32> to vector<16x256xf32>
    %115 = arith.mulf %113, %114 : vector<16x256xf32>
    %116 = vector.broadcast %3 : vector<16x1xf32> to vector<16x256xf32>
    %117 = arith.addf %115, %116 : vector<16x256xf32>
    %cst_57 = arith.constant 0.000000e+00 : f32
    %118 = vector.broadcast %cst_57 : f32 to vector<16x256xf32>
    %119 = arith.maximumf %117, %118 : vector<16x256xf32>
    %cst_58 = arith.constant 0.000000e+00 : f32
    %120 = vector.broadcast %cst_58 : f32 to vector<16x128xf32>
    %c0_59 = arith.constant 0 : index
    %c0_60 = arith.constant 0 : index
    %121 = vector.load %arg6[%c0_59, %c0_60] : memref<16x512xf32, #tpu.memory_space<vmem>>, vector<16x128xf32>
    tpu.vector_store %arg6[%c0_59, %c0_60], %120 {strides = array<i32>} : memref<16x512xf32, #tpu.memory_space<vmem>>, vector<16x128xf32>,
    %c0_61 = arith.constant 0 : index
    %c384_62 = arith.constant 384 : index
    %122 = vector.load %arg6[%c0_61, %c384_62] : memref<16x512xf32, #tpu.memory_space<vmem>>, vector<16x128xf32>
    tpu.vector_store %arg6[%c0_61, %c384_62], %120 {strides = array<i32>} : memref<16x512xf32, #tpu.memory_space<vmem>>, vector<16x128xf32>,
    %c0_63 = arith.constant 0 : index
    %c128_64 = arith.constant 128 : index
    %123 = vector.load %arg6[%c0_63, %c128_64] : memref<16x512xf32, #tpu.memory_space<vmem>>, vector<16x256xf32>
    tpu.vector_store %arg6[%c0_63, %c128_64], %119 {strides = array<i32>} : memref<16x512xf32, #tpu.memory_space<vmem>>, vector<16x256xf32>,
    %124 = tpu.iota {dimensions = array<i32: 1>} : vector<1x256xi32>
    %c16_i32_65 = arith.constant 16 : i32
    %c0_i32_66 = arith.constant 0 : i32
    %125 = arith.cmpi eq, %c16_i32_65, %c0_i32_66 : i32
    %c1_i32_67 = arith.constant 1 : i32
    %126 = arith.select %125, %c1_i32_67, %c16_i32_65 : i32
    %127 = vector.broadcast %126 : i32 to vector<1x256xi32>
    %128 = arith.remsi %124, %127 : vector<1x256xi32>
    %c0_i32_68 = arith.constant 0 : i32
    %129 = vector.broadcast %c0_i32_68 : i32 to vector<1x256xi32>
    %130 = arith.cmpi ne, %128, %129 : vector<1x256xi32>
    %c0_i32_69 = arith.constant 0 : i32
    %131 = vector.broadcast %c0_i32_69 : i32 to vector<1x256xi32>
    %132 = arith.cmpi slt, %128, %131 : vector<1x256xi32>
    %c0_i32_70 = arith.constant 0 : i32
    %133 = arith.cmpi slt, %126, %c0_i32_70 : i32
    %134 = vector.broadcast %133 : i1 to vector<1x256xi1>
    %135 = vector.broadcast %134 : vector<1x256xi1> to vector<1x256xi1>
    %136 = arith.xori %132, %135 : vector<1x256xi1>
    %137 = arith.andi %136, %130 : vector<1x256xi1>
    %138 = vector.broadcast %126 : i32 to vector<1x256xi32>
    %139 = arith.addi %128, %138 : vector<1x256xi32>
    %140 = arith.select %137, %139, %128 : vector<1x256xi1>, vector<1x256xi32>
    %c1_i32_71 = arith.constant 1 : i32
    %141 = vector.broadcast %c1_i32_71 : i32 to vector<1x256xi32>
    %142 = arith.cmpi sge, %140, %141 : vector<1x256xi32>
    %c14_i32_72 = arith.constant 14 : i32
    %143 = vector.broadcast %c14_i32_72 : i32 to vector<1x256xi32>
    %144 = arith.cmpi sle, %140, %143 : vector<1x256xi32>
    %cst_73 = arith.constant 0.000000e+00 : f32
    %145 = vector.broadcast %cst_73 : f32 to vector<16x256xf32>
    %c0_74 = arith.constant 0 : index
    %c111_75 = arith.constant 111 : index
    %146 = vector.load %arg6[%c0_74, %c111_75] : memref<16x512xf32, #tpu.memory_space<vmem>>, vector<16x256xf32>
    %cst_76 = arith.constant 0.000000e+00 : f32
    %147 = vector.broadcast %cst_76 : f32 to vector<16x256xf32>
    %148 = vector.shape_cast %142 : vector<1x256xi1> to vector<1x256xi1>
    %149 = vector.broadcast %148 : vector<1x256xi1> to vector<16x256xi1>
    %150 = arith.select %149, %146, %147 : vector<16x256xi1>, vector<16x256xf32>
    %c0_77 = arith.constant 0 : index
    %c0_78 = arith.constant 0 : index
    %c0_79 = arith.constant 0 : index
    %151 = vector.load %arg3[%c0_77, %c0_78, %c0_79] : memref<9x16x16xbf16, #tpu.memory_space<vmem>>, vector<1x16x16xbf16>
    %152 = vector.shape_cast %151 : vector<1x16x16xbf16> to vector<16x16xbf16>
    %153 = arith.truncf %150 : vector<16x256xf32> to vector<16x256xbf16>
    %cst_80 = arith.constant dense<0.000000e+00> : vector<16x256xf32>
    %154 = tpu.matmul %152, %153, %cst_80 {dimension_numbers = #tpu.dot_dimension_numbers<[1], [0], [0], [1], [0, 0, 1, 1], [], []>} : vector<16x16xbf16>, vector<16x256xbf16>, vector<16x256xf32> -> vector<16x256xf32>
    %155 = arith.addf %145, %154 : vector<16x256xf32>
    %c0_81 = arith.constant 0 : index
    %c112_82 = arith.constant 112 : index
    %156 = vector.load %arg6[%c0_81, %c112_82] : memref<16x512xf32, #tpu.memory_space<vmem>>, vector<16x256xf32>
    %c1_83 = arith.constant 1 : index
    %c0_84 = arith.constant 0 : index
    %c0_85 = arith.constant 0 : index
    %157 = vector.load %arg3[%c1_83, %c0_84, %c0_85] : memref<9x16x16xbf16, #tpu.memory_space<vmem>>, vector<1x16x16xbf16>
    %158 = vector.shape_cast %157 : vector<1x16x16xbf16> to vector<16x16xbf16>
    %159 = arith.truncf %156 : vector<16x256xf32> to vector<16x256xbf16>
    %cst_86 = arith.constant dense<0.000000e+00> : vector<16x256xf32>
    %160 = tpu.matmul %158, %159, %cst_86 {dimension_numbers = #tpu.dot_dimension_numbers<[1], [0], [0], [1], [0, 0, 1, 1], [], []>} : vector<16x16xbf16>, vector<16x256xbf16>, vector<16x256xf32> -> vector<16x256xf32>
    %161 = arith.addf %155, %160 : vector<16x256xf32>
    %c0_87 = arith.constant 0 : index
    %c113_88 = arith.constant 113 : index
    %162 = vector.load %arg6[%c0_87, %c113_88] : memref<16x512xf32, #tpu.memory_space<vmem>>, vector<16x256xf32>
    %cst_89 = arith.constant 0.000000e+00 : f32
    %163 = vector.broadcast %cst_89 : f32 to vector<16x256xf32>
    %164 = vector.shape_cast %144 : vector<1x256xi1> to vector<1x256xi1>
    %165 = vector.broadcast %164 : vector<1x256xi1> to vector<16x256xi1>
    %166 = arith.select %165, %162, %163 : vector<16x256xi1>, vector<16x256xf32>
    %c2_90 = arith.constant 2 : index
    %c0_91 = arith.constant 0 : index
    %c0_92 = arith.constant 0 : index
    %167 = vector.load %arg3[%c2_90, %c0_91, %c0_92] : memref<9x16x16xbf16, #tpu.memory_space<vmem>>, vector<1x16x16xbf16>
    %168 = vector.shape_cast %167 : vector<1x16x16xbf16> to vector<16x16xbf16>
    %169 = arith.truncf %166 : vector<16x256xf32> to vector<16x256xbf16>
    %cst_93 = arith.constant dense<0.000000e+00> : vector<16x256xf32>
    %170 = tpu.matmul %168, %169, %cst_93 {dimension_numbers = #tpu.dot_dimension_numbers<[1], [0], [0], [1], [0, 0, 1, 1], [], []>} : vector<16x16xbf16>, vector<16x256xbf16>, vector<16x256xf32> -> vector<16x256xf32>
    %171 = arith.addf %161, %170 : vector<16x256xf32>
    %c0_94 = arith.constant 0 : index
    %c127_95 = arith.constant 127 : index
    %172 = vector.load %arg6[%c0_94, %c127_95] : memref<16x512xf32, #tpu.memory_space<vmem>>, vector<16x256xf32>
    %cst_96 = arith.constant 0.000000e+00 : f32
    %173 = vector.broadcast %cst_96 : f32 to vector<16x256xf32>
    %174 = vector.shape_cast %142 : vector<1x256xi1> to vector<1x256xi1>
    %175 = vector.broadcast %174 : vector<1x256xi1> to vector<16x256xi1>
    %176 = arith.select %175, %172, %173 : vector<16x256xi1>, vector<16x256xf32>
    %c3_97 = arith.constant 3 : index
    %c0_98 = arith.constant 0 : index
    %c0_99 = arith.constant 0 : index
    %177 = vector.load %arg3[%c3_97, %c0_98, %c0_99] : memref<9x16x16xbf16, #tpu.memory_space<vmem>>, vector<1x16x16xbf16>
    %178 = vector.shape_cast %177 : vector<1x16x16xbf16> to vector<16x16xbf16>
    %179 = arith.truncf %176 : vector<16x256xf32> to vector<16x256xbf16>
    %cst_100 = arith.constant dense<0.000000e+00> : vector<16x256xf32>
    %180 = tpu.matmul %178, %179, %cst_100 {dimension_numbers = #tpu.dot_dimension_numbers<[1], [0], [0], [1], [0, 0, 1, 1], [], []>} : vector<16x16xbf16>, vector<16x256xbf16>, vector<16x256xf32> -> vector<16x256xf32>
    %181 = arith.addf %171, %180 : vector<16x256xf32>
    %c0_101 = arith.constant 0 : index
    %c128_102 = arith.constant 128 : index
    %182 = vector.load %arg6[%c0_101, %c128_102] : memref<16x512xf32, #tpu.memory_space<vmem>>, vector<16x256xf32>
    %c4_103 = arith.constant 4 : index
    %c0_104 = arith.constant 0 : index
    %c0_105 = arith.constant 0 : index
    %183 = vector.load %arg3[%c4_103, %c0_104, %c0_105] : memref<9x16x16xbf16, #tpu.memory_space<vmem>>, vector<1x16x16xbf16>
    %184 = vector.shape_cast %183 : vector<1x16x16xbf16> to vector<16x16xbf16>
    %185 = arith.truncf %182 : vector<16x256xf32> to vector<16x256xbf16>
    %cst_106 = arith.constant dense<0.000000e+00> : vector<16x256xf32>
    %186 = tpu.matmul %184, %185, %cst_106 {dimension_numbers = #tpu.dot_dimension_numbers<[1], [0], [0], [1], [0, 0, 1, 1], [], []>} : vector<16x16xbf16>, vector<16x256xbf16>, vector<16x256xf32> -> vector<16x256xf32>
    %187 = arith.addf %181, %186 : vector<16x256xf32>
    %c0_107 = arith.constant 0 : index
    %c129_108 = arith.constant 129 : index
    %188 = vector.load %arg6[%c0_107, %c129_108] : memref<16x512xf32, #tpu.memory_space<vmem>>, vector<16x256xf32>
    %cst_109 = arith.constant 0.000000e+00 : f32
    %189 = vector.broadcast %cst_109 : f32 to vector<16x256xf32>
    %190 = vector.shape_cast %144 : vector<1x256xi1> to vector<1x256xi1>
    %191 = vector.broadcast %190 : vector<1x256xi1> to vector<16x256xi1>
    %192 = arith.select %191, %188, %189 : vector<16x256xi1>, vector<16x256xf32>
    %c5_110 = arith.constant 5 : index
    %c0_111 = arith.constant 0 : index
    %c0_112 = arith.constant 0 : index
    %193 = vector.load %arg3[%c5_110, %c0_111, %c0_112] : memref<9x16x16xbf16, #tpu.memory_space<vmem>>, vector<1x16x16xbf16>
    %194 = vector.shape_cast %193 : vector<1x16x16xbf16> to vector<16x16xbf16>
    %195 = arith.truncf %192 : vector<16x256xf32> to vector<16x256xbf16>
    %cst_113 = arith.constant dense<0.000000e+00> : vector<16x256xf32>
    %196 = tpu.matmul %194, %195, %cst_113 {dimension_numbers = #tpu.dot_dimension_numbers<[1], [0], [0], [1], [0, 0, 1, 1], [], []>} : vector<16x16xbf16>, vector<16x256xbf16>, vector<16x256xf32> -> vector<16x256xf32>
    %197 = arith.addf %187, %196 : vector<16x256xf32>
    %c0_114 = arith.constant 0 : index
    %c143_115 = arith.constant 143 : index
    %198 = vector.load %arg6[%c0_114, %c143_115] : memref<16x512xf32, #tpu.memory_space<vmem>>, vector<16x256xf32>
    %cst_116 = arith.constant 0.000000e+00 : f32
    %199 = vector.broadcast %cst_116 : f32 to vector<16x256xf32>
    %200 = vector.shape_cast %142 : vector<1x256xi1> to vector<1x256xi1>
    %201 = vector.broadcast %200 : vector<1x256xi1> to vector<16x256xi1>
    %202 = arith.select %201, %198, %199 : vector<16x256xi1>, vector<16x256xf32>
    %c6_117 = arith.constant 6 : index
    %c0_118 = arith.constant 0 : index
    %c0_119 = arith.constant 0 : index
    %203 = vector.load %arg3[%c6_117, %c0_118, %c0_119] : memref<9x16x16xbf16, #tpu.memory_space<vmem>>, vector<1x16x16xbf16>
    %204 = vector.shape_cast %203 : vector<1x16x16xbf16> to vector<16x16xbf16>
    %205 = arith.truncf %202 : vector<16x256xf32> to vector<16x256xbf16>
    %cst_120 = arith.constant dense<0.000000e+00> : vector<16x256xf32>
    %206 = tpu.matmul %204, %205, %cst_120 {dimension_numbers = #tpu.dot_dimension_numbers<[1], [0], [0], [1], [0, 0, 1, 1], [], []>} : vector<16x16xbf16>, vector<16x256xbf16>, vector<16x256xf32> -> vector<16x256xf32>
    %207 = arith.addf %197, %206 : vector<16x256xf32>
    %c0_121 = arith.constant 0 : index
    %c144_122 = arith.constant 144 : index
    %208 = vector.load %arg6[%c0_121, %c144_122] : memref<16x512xf32, #tpu.memory_space<vmem>>, vector<16x256xf32>
    %c7_123 = arith.constant 7 : index
    %c0_124 = arith.constant 0 : index
    %c0_125 = arith.constant 0 : index
    %209 = vector.load %arg3[%c7_123, %c0_124, %c0_125] : memref<9x16x16xbf16, #tpu.memory_space<vmem>>, vector<1x16x16xbf16>
    %210 = vector.shape_cast %209 : vector<1x16x16xbf16> to vector<16x16xbf16>
    %211 = arith.truncf %208 : vector<16x256xf32> to vector<16x256xbf16>
    %cst_126 = arith.constant dense<0.000000e+00> : vector<16x256xf32>
    %212 = tpu.matmul %210, %211, %cst_126 {dimension_numbers = #tpu.dot_dimension_numbers<[1], [0], [0], [1], [0, 0, 1, 1], [], []>} : vector<16x16xbf16>, vector<16x256xbf16>, vector<16x256xf32> -> vector<16x256xf32>
    %213 = arith.addf %207, %212 : vector<16x256xf32>
    %c0_127 = arith.constant 0 : index
    %c145_128 = arith.constant 145 : index
    %214 = vector.load %arg6[%c0_127, %c145_128] : memref<16x512xf32, #tpu.memory_space<vmem>>, vector<16x256xf32>
    %cst_129 = arith.constant 0.000000e+00 : f32
    %215 = vector.broadcast %cst_129 : f32 to vector<16x256xf32>
    %216 = vector.shape_cast %144 : vector<1x256xi1> to vector<1x256xi1>
    %217 = vector.broadcast %216 : vector<1x256xi1> to vector<16x256xi1>
    %218 = arith.select %217, %214, %215 : vector<16x256xi1>, vector<16x256xf32>
    %c8_130 = arith.constant 8 : index
    %c0_131 = arith.constant 0 : index
    %c0_132 = arith.constant 0 : index
    %219 = vector.load %arg3[%c8_130, %c0_131, %c0_132] : memref<9x16x16xbf16, #tpu.memory_space<vmem>>, vector<1x16x16xbf16>
    %220 = vector.shape_cast %219 : vector<1x16x16xbf16> to vector<16x16xbf16>
    %221 = arith.truncf %218 : vector<16x256xf32> to vector<16x256xbf16>
    %cst_133 = arith.constant dense<0.000000e+00> : vector<16x256xf32>
    %222 = tpu.matmul %220, %221, %cst_133 {dimension_numbers = #tpu.dot_dimension_numbers<[1], [0], [0], [1], [0, 0, 1, 1], [], []>} : vector<16x16xbf16>, vector<16x256xbf16>, vector<16x256xf32> -> vector<16x256xf32>
    %223 = arith.addf %213, %222 : vector<16x256xf32>
    %224 = vector.broadcast %4 : vector<16x1xf32> to vector<16x256xf32>
    %225 = arith.mulf %223, %224 : vector<16x256xf32>
    %226 = vector.broadcast %5 : vector<16x1xf32> to vector<16x256xf32>
    %227 = arith.addf %225, %226 : vector<16x256xf32>
    %228 = arith.addf %227, %113 : vector<16x256xf32>
    %cst_134 = arith.constant 0.000000e+00 : f32
    %229 = vector.broadcast %cst_134 : f32 to vector<16x256xf32>
    %230 = arith.maximumf %228, %229 : vector<16x256xf32>
    %c0_135 = arith.constant 0 : index
    %c0_136 = arith.constant 0 : index
    %c0_137 = arith.constant 0 : index
    %231 = vector.load %arg5[%c0_135, %c0_136, %c0_137] : memref<1x16x256xf32, #tpu.memory_space<vmem>>, vector<1x16x256xf32>
    %232 = vector.shape_cast %231 : vector<1x16x256xf32> to vector<16x256xf32>
    %233 = vector.shape_cast %230 : vector<16x256xf32> to vector<1x16x256xf32>
    tpu.vector_store %arg5[%c0_135, %c0_136, %c0_137], %233 {strides = array<i32>} : memref<1x16x256xf32, #tpu.memory_space<vmem>>, vector<1x16x256xf32>,
    return
  }
  func.func @transform_0(%arg0: i32) -> (i32, i32, i32) {
    %c0_i32 = arith.constant 0 : i32
    %c0_i32_0 = arith.constant 0 : i32
    %c0_i32_1 = arith.constant 0 : i32
    return %arg0, %c0_i32, %c0_i32_0 : i32, i32, i32
  }
  func.func @transform_1(%arg0: i32) -> (i32, i32, i32) {
    %c0_i32 = arith.constant 0 : i32
    %c0_i32_0 = arith.constant 0 : i32
    %c0_i32_1 = arith.constant 0 : i32
    %c0_i32_2 = arith.constant 0 : i32
    return %c0_i32, %c0_i32_0, %c0_i32_1 : i32, i32, i32
  }
  func.func @transform_2(%arg0: i32) -> (i32, i32, i32) {
    %c0_i32 = arith.constant 0 : i32
    %c0_i32_0 = arith.constant 0 : i32
    %c0_i32_1 = arith.constant 0 : i32
    %c0_i32_2 = arith.constant 0 : i32
    return %c0_i32, %c0_i32_0, %c0_i32_1 : i32, i32, i32
  }
  func.func @transform_3(%arg0: i32) -> (i32, i32) {
    %c0_i32 = arith.constant 0 : i32
    %c0_i32_0 = arith.constant 0 : i32
    %c0_i32_1 = arith.constant 0 : i32
    return %c0_i32, %c0_i32_0 : i32, i32
  }
  func.func @transform_4(%arg0: i32) -> (i32, i32, i32) {
    %c0_i32 = arith.constant 0 : i32
    %c0_i32_0 = arith.constant 0 : i32
    %c0_i32_1 = arith.constant 0 : i32
    return %arg0, %c0_i32, %c0_i32_0 : i32, i32, i32
  }
}

</mosaic_0001>

<bundles_post_ra>
// kernel: tpu_custom_call.1
= control target key start
LH: loop header
LB: loop body
LE: loop exit
PB: predicated region body
PF: predicated region fallthrough
CT: control target
= control target key end

     0   :  { %9 = vsyncpa [#allocation4], 0  ;;  %s2503_s0 = inlined_call_operand.vmem [shape: f32[2,8,256], index: 0, kind: input, shape index: {}]   ;;  %s2504_s1 = inlined_call_operand.vmem [shape: bf16[9,16,8], index: 1, kind: input, shape index: {}]   ;;  %s2505_s2 = inlined_call_operand.vmem [shape: bf16[9,16,16], index: 2, kind: input, shape index: {}]   ;;  %s2506_s3 = inlined_call_operand.vmem [shape: f32[16,8], index: 3, kind: input, shape index: {}]   ;;  %s2507_s4 = inlined_call_operand.hbm [shape: f32[2,16,256], index: 4, kind: output, shape index: {}]  }
   0x1   :  { %11 = vsyncpa [#allocation4 + $0x1], 0  ;;  %s2066_s15 = smov 0   ;;  %s2068_s16 = smov 0  }
   0x2   :  { %s2070_s17 = smov 0   ;;  %s2072_s18 = smov 0  }
   0x3 LB: > { %s2087_s19 = sadd.s32 4294967295, %s2023_s18   ;;  %s1567_s20 = sadd.s32 4294967294, %s2023_s18   ;;  %s2023_s18 = sphi %s2072_s18, %s2529_s18   ;;  %s2019_s17 = sphi %s2070_s17, %s2528_s17   ;;  %s2015_s16 = sphi %s2068_s16, %s2527_s16   ;;  %s2011_s15 = sphi %s2066_s15, %s2526_s15  }
   0x4   : > { %s2091_s21 = sadd.s32 1, %s2023_s18   ;;  %s113_s22 = sadd.s32 1, %s2019_s17 }
   0x5   : > { %s110_s23 = ssub.s32 %s2023_s18, %s2091_s21  ;;  %p123_p0 = scmp.ne.s32.totalorder %s2019_s17, %s2015_s16 }
   0x6   : > { %p111_p1 = scmp.eq.s32.totalorder %s110_s23, 0  ;;  %p124_p2 = scmp.eq.s32.totalorder %s2087_s19, 1 }
   0x7   : > { %p129_p3 = scmp.ne.s32.totalorder %s2015_s16, %s2011_s15  ;;  %p130_p4 = scmp.eq.s32.totalorder %s1567_s20, 1 }
   0x8   : > { %s2102_s24 = scalar_select %p111_p1, %s2019_s17, %s113_s22  }
   0x9   : > { %p2104_p5 = por %p124_p2, %p123_p0  ;;  %p2108_p6 = por %p130_p4, %p129_p3 }
   0xa   : > { %p1570_p7 = scmp.ge.s32.totalorder %s2023_s18, 1  ;;  %p165_p8 = scmp.lt.s32.totalorder %s2023_s18, 3 }
   0xc   : > { %p166_p9 = pnand %p1570_p7, %p165_p8 }
   0xd   : > { %p191_p10 = scmp.lt.s32.totalorder (!%p166_p9), %s2087_s19, 1  ;;  %s2026_s27 = smov (!%p166_p9), 16  }
   0xe   : > { %169 = sbr.rel (%p166_p9) target bundleno = 700 (0x2bc), region = 36  ;;  %s2027_s7 = smov (!%p166_p9), 17  }
   0xf   : > { %s2029_s8 = smov (!%p166_p9), 15   ;;  %s2030_s9 = smov (!%p166_p9), 1  }
  0x10   : > { %s2031_s10 = smov (!%p166_p9), 127   ;;  %s2032_s11 = smov (!%p166_p9), 113  }
  0x11   : > { %s2033_s12 = smov (!%p166_p9), 112   ;;  %s2034_s13 = smov (!%p166_p9), 111  }
  0x12   : > { %s1981_s23 = scalar_lea.hbm (!%p166_p9), %s2507_s4, 64 }
  0x13   : > { %v2025_v0 = vmov 0.0|0.0   ;;  %s192_s28 = scalar_select %p191_p10, %s2087_s19, 1  ;;  %v2028_v5 = vmov 0.0   ;;  %v207_v9 = vlaneseq  ;;  %vm379_vm0 = vcmask 121856   ;;  %v1757_v28 = vld [vmem:[%s2504_s1 + $0x8] sm:$0xff]  ;;  %v1756_v55 = vld [vmem:[%s2504_s1] sm:$0xff] }
  0x14   : > { %279 = vrot.lane.b32.xlu0 %v2025_v0, %s2026_s27  ;;  %vm285_vm2 = vcmask 130048   ;;  %vm292_vm3 = vcmask 1043456   ;;  %vm288_vm4 = vcmask 64512   ;;  %vm254_vm7 = vcmask 138240   ;;  %v1758_v63 = vld [vmem:[%s2504_s1 + $0x10] sm:$0xff] }
  0x15   : > { %s1755_s29 = sshll.u32 %s192_s28, 4  ;;  %v208_v12 = vand.u32 127, %v207_v9  ;;  %vm626_vm9 = vcmask 924672   ;;  %vm443_vm10 = vcmask 7168   ;;  %vm562_vm11 = vcmask 1039360  }
  0x16   : > { %s195_s6 = scalar_lea.vmem %s2503_s0, %s1755_s29  ;;  %vm704_vm12 = vcmask 916480   ;;  %vm754_vm13 = vcmask 908288  }
  0x17   : > { %v200_v1 = vld [vmem:[%s195_s6 + $0x8] sm:$0xff]  ;;  %v199_v2 = vld [vmem:[%s195_s6] sm:$0xff]  ;;  %v214_v14 = vand.u32 15, %v208_v12  ;;  %v209_v24 = vadd.s32 128, %v208_v12 }
  0x18   : > { %v2121_v3 = vpack.c.bf16 %v200_v1, %v200_v1  ;;  %v269_v4 = vpack.c.bf16 %v199_v2, %v199_v2  ;;  %252 = vrot.lane.b32.xlu2 %v200_v1, %s2027_s7  ;;  %v1835_v6 = vpack.i.bf16 %v199_v2, %v2028_v5  ;;  %v1845_v7 = vpack.i.bf16 %v200_v1, %v199_v2 }
  0x19   : > { %vm2147_vm1 = vcmp.le.s32.totalorder %v214_v14, 14  ;;  %v221_v30 = vand.u32 15, %v209_v24  ;;  %vm2169_vm6 = vcmp.ge.s32.totalorder %v214_v14, 1 }
  0x1a   : > { %283 = vrot.lane.b32.xlu1 %v2121_v3, %s2026_s27  ;;  %v513_v31 = vsel %vm292_vm3, %v269_v4, 0  ;;  %v516_v47 = vsel %vm292_vm3, %v2121_v3, 0  ;;  %vm2341_vm14 = vmpackc.low %vm2147_vm1, %vm2147_vm1 }
  0x1b   : > { %vm2165_vm5 = vcmp.le.s32.totalorder %v221_v30, 14  ;;  %vm2174_vm8 = vcmp.ge.s32.totalorder %v221_v30, 1 }
  0x1c   : > { %281 = vrot.lane.b32.xlu0 %v269_v4, %s2026_s27  ;;  %vm2352_vm15 = vmpackc.low %vm2165_vm5, %vm2165_vm5 }
  0x20   : > { %1836 = vrot.lane.b32.xlu2 %v1835_v6, %s2029_s8 }
  0x22   : > { %1831 = vrot.lane.b32.xlu1 %v1835_v6, %s2027_s7 }
  0x24   : > { %377 = vrot.lane.b32.xlu0 %v200_v1, %s2029_s8 }
  0x28   : > { %441 = vrot.lane.b32.xlu2 %v200_v1, %s2030_s9 }
  0x2a   : > { %1841 = vrot.lane.b32.xlu1 %v1835_v6, %s2030_s9 }
  0x2c   : > { %1846 = vrot.lane.b32.xlu0 %v1845_v7, %s2031_s10 }
  0x30   : > { %1851 = vrot.lane.b32.xlu2 %v1845_v7, %s2032_s11 }
  0x32   : > { %560 = vrot.lane.b32.xlu1 %v2028_v5, %s2031_s10 }
  0x34   : > { %624 = vrot.lane.b32.xlu0 %v2028_v5, %s2032_s11 }
  0x38   : > { %700 = vrot.lane.b32.xlu2 %v2121_v3, %s2033_s12 }
  0x3a   : > { %698 = vrot.lane.b32.xlu1 %v269_v4, %s2033_s12 }
  0x3c   : > { %702 = vrot.lane.b32.xlu0 %v2025_v0, %s2033_s12 }
  0x40   : > { %752 = vrot.lane.b32.xlu2 %v2028_v5, %s2034_s13 }
  0x42   : > { %1856 = vrot.lane.b32.xlu1 %v1845_v7, %s2034_s13 }
  0x72   : > { %v253_v8 = vpop.permute.xlu2 %252 }
  0x7a   : > { %v1837_v10 = vpop.permute.xlu2 %1836 }
  0x7b   : > { %v1838_v11 = vunpack.i.l.bf16 %v1837_v10  ;;  %v1839_v13 = vunpack.i.h.bf16 %v1837_v10 }
  0x7d   : > { %v380_v16 = vsel %vm379_vm0, %v1838_v11, %v1839_v13 }
  0x7e   : > { %v384_v18 = vsel %vm2147_vm1, %v380_v16, 0.0 }
  0x7f   : > { %v389_v19 = vpack.c.bf16 %v384_v18, %v384_v18 }
  0x81   : > { %v400_v25 = vsel %vm292_vm3, %v389_v19, 0 }
  0x82   : > { %v442_v29 = vpop.permute.xlu2 %441 }
  0x86   : > { %v280_v17 = vpop.permute.xlu0 %279 }
  0x8a   : > { %v1852_v44 = vpop.permute.xlu2 %1851 }
  0x8b   : > { %v1853_v48 = vunpack.i.l.bf16 %v1852_v44  ;;  %v1854_v52 = vunpack.i.h.bf16 %v1852_v44 }
  0x8c   : > { %v284_v20 = vpop.permute.xlu1 %283 }
  0x8d   : > { %v627_v58 = vsel %vm626_vm9, %v1853_v48, %v1854_v52 }
  0x8e   : > { %v282_v21 = vpop.permute.xlu0 %281 }
  0x8f   : > { %v286_v22 = vsel %vm285_vm2, %v280_v17, %v282_v21  ;;  %v287_v23 = vsel %vm285_vm2, %v282_v21, %v284_v20 }
  0x90   : > { %v294_v26 = vsel %vm292_vm3, %v286_v22, 0  ;;  %v297_v27 = vsel %vm292_vm3, %v287_v23, 0 }
  0x91   : > { %306 = vmatpush.bf16.msra.mxu0 %v294_v26  ;;  %320 = vmatpush.bf16.msra.mxu1 %v297_v27 }
  0x94   : > { %1581 = vmatmul.msk.bf16.vlgmr.msra.gmra.mxu1 %vm288_vm4, %v1757_v28  ;;  %1580 = vmatmul.msk.bf16.vlgmr.msra.gmra.mxu0 %vm288_vm4, %v1757_v28  ;;  %v1832_v33 = vpop.permute.xlu1 %1831  ;;  %v701_v28 = vpop.permute.xlu2 %700 }
  0x95   : > { %412 = vmatpush.bf16.msrb.mxu0 %v400_v25  ;;  %v1834_v36 = vunpack.i.h.bf16 %v1832_v33  ;;  %v1833_v37 = vunpack.i.l.bf16 %v1832_v33 }
  0x96   : > { %v378_v34 = vpop.permute.xlu0 %377 }
  0x97   : > { %v381_v38 = vsel %vm379_vm0, %v1839_v13, %v378_v34  ;;  %v255_v41 = vsel %vm254_vm7, %v1833_v37, %v1834_v36  ;;  %v256_v42 = vsel %vm254_vm7, %v1834_v36, %v253_v8  ;;  %v631_v8 = vsel %vm2169_vm6, %v627_v58, 0.0  ;;  %v1760_v36 = vld [vmem:[%s2504_s1 + $0x20] sm:$0xff]  ;;  %v1762_v58 = vld [vmem:[%s2504_s1 + $0x30] sm:$0xff] }
  0x98   : > { %v385_v40 = vsel %vm2165_vm5, %v381_v38, 0.0  ;;  %v259_v45 = vsel %vm2169_vm6, %v255_v41, 0.0  ;;  %v260_v46 = vsel %vm2174_vm8, %v256_v42, 0.0  ;;  %v636_v12 = vpack.c.bf16 %v631_v8, %v631_v8  ;;  %v2247_v41 = vld [vmem:[%s2506_s3 + $0x8] sm:$0xff] }
  0x99   : > { %525 = vmatpush.bf16.msra.mxu0 %v513_v31  ;;  %v390_v43 = vpack.c.bf16 %v385_v40, %v385_v40  ;;  %v263_v49 = vpack.c.bf16 %v259_v45, %v259_v45  ;;  %v264_v50 = vpack.c.bf16 %v260_v46, %v260_v46  ;;  %v2242_v40 = vld [vmem:[%s2506_s3] sm:$0xff]  ;;  %v2035_v42 = vmov 0  }
  0x9a   : > { %v647_v17 = vsel %vm292_vm3, %v636_v12, 0  ;;  %1860 = vset.pattern.permute.xlu0 %v2035_v42  ;;  %1861 = vset.pattern.permute.xlu1 %v2035_v42 }
  0x9b   : > { %v403_v51 = vsel %vm292_vm3, %v390_v43, 0  ;;  %v336_v53 = vsel %vm292_vm3, %v263_v49, 0  ;;  %v339_v54 = vsel %vm292_vm3, %v264_v50, 0  ;;  %814 = vperm.xlu0 %1860, %v2242_v40   ;;  %819 = vperm.xlu1 %1861, %v2247_v41  }
  0x9c   : > { %426 = vmatpush.bf16.msrb.mxu1 %v403_v51  ;;  %348 = vmatpush.bf16.msra.mxu2 %v336_v53  ;;  %v1842_v56 = vpop.permute.xlu1 %1841  ;;  %v753_v44 = vpop.permute.xlu2 %752 }
  0x9d   : > { %362 = vmatpush.bf16.msra.mxu3 %v339_v54  ;;  %v1844_v59 = vunpack.i.h.bf16 %v1842_v56  ;;  %v1843_v60 = vunpack.i.l.bf16 %v1842_v56  ;;  %v1761_v54 = vld [vmem:[%s2504_s1 + $0x28] sm:$0xff] }
  0x9e   : > { %v1847_v57 = vpop.permute.xlu0 %1846 }
  0x9f   : > { %v1849_v61 = vunpack.i.h.bf16 %v1847_v57  ;;  %v1848_v62 = vunpack.i.l.bf16 %v1847_v57  ;;  %1586 = vmatmul.msk.bf16.vlgmr.msra.gmra.mxu2 %vm288_vm4, %v1756_v55  ;;  %v445_v1 = vsel %vm443_vm10, %v1844_v59, %v442_v29  ;;  %v444_v2 = vsel %vm443_vm10, %v1843_v60, %v1844_v59  ;;  %v1759_v29 = vld [vmem:[%s2504_s1 + $0x18] sm:$0xff]  ;;  %v1764_v60 = vld [vmem:[%s2504_s1 + $0x40] sm:$0xff] }
  0xa0   : > { %539 = vmatpush.bf16.msra.mxu1 %v516_v47  ;;  %1587 = vmatmul.msk.bf16.vlgmr.msra.gmra.mxu3 %vm288_vm4, %v1756_v55  ;;  %v448_v4 = vsel %vm2169_vm6, %v444_v2, 0.0  ;;  %v449_v6 = vsel %vm2174_vm8, %v445_v1, 0.0  ;;  %v2036_v47 = vmov 1   ;;  %v2037_v57 = vmov 2   ;;  %v1763_v59 = vld [vmem:[%s2504_s1 + $0x38] sm:$0xff] }
  0xa1   : > { %v563_v3 = vsel %vm562_vm11, %v1848_v62, %v1849_v61  ;;  %v453_v9 = vpack.c.bf16 %v448_v4, %v448_v4  ;;  %v454_v10 = vpack.c.bf16 %v449_v6, %v449_v6  ;;  %1862 = vset.pattern.permute.xlu2 %v2036_v47 }
  0xa2   : > { %v567_v7 = vsel %vm2147_vm1, %v563_v3, 0.0  ;;  %827 = vperm.xlu2 %1862, %v2242_v40  }
  0xa3   : > { %v572_v11 = vpack.c.bf16 %v567_v7, %v567_v7  ;;  %v464_v13 = vsel %vm292_vm3, %v453_v9, 0  ;;  %v467_v14 = vsel %vm292_vm3, %v454_v10, 0  ;;  %1863 = vset.pattern.permute.xlu1 %v2036_v47  ;;  %1865 = vset.pattern.permute.xlu0 %v2037_v57 }
  0xa4   : > { %1595 = vmatmul.msk.bf16.vlgmr.msrb.gmra.mxu1 %vm288_vm4, %v1758_v63  ;;  %1594 = vmatmul.msk.bf16.vlgmr.msrb.gmra.mxu0 %vm288_vm4, %v1758_v63  ;;  %v561_v18 = vpop.permute.xlu1 %560 }
  0xa5   : > { %v583_v16 = vsel %vm292_vm3, %v572_v11, 0  ;;  %476 = vmatpush.bf16.msrb.mxu2 %v464_v13  ;;  %490 = vmatpush.bf16.msrb.mxu3 %v467_v14  ;;  %v564_v20 = vsel %vm562_vm11, %v1849_v61, %v561_v18 }
  0xa6   : > { %v625_v19 = vpop.permute.xlu0 %624  ;;  %659 = vmatpush.bf16.msrb.mxu0 %v647_v17  ;;  %v568_v22 = vsel %vm2165_vm5, %v564_v20, 0.0  ;;  %831 = vperm.xlu1 %1863, %v2247_v41  }
  0xa7   : > { %v628_v21 = vsel %vm626_vm9, %v1854_v52, %v625_v19  ;;  %v573_v24 = vpack.c.bf16 %v568_v22, %v568_v22  ;;  %843 = vperm.xlu0 %1865, %v2247_v41  }
  0xa8   : > { %v632_v23 = vsel %vm2174_vm8, %v628_v21, 0.0 }
  0xa9   : > { %595 = vmatpush.bf16.msra.mxu2 %v583_v16  ;;  %v637_v25 = vpack.c.bf16 %v632_v23, %v632_v23  ;;  %v586_v26 = vsel %vm292_vm3, %v573_v24, 0 }
  0xaa   : > { %609 = vmatpush.bf16.msra.mxu3 %v586_v26  ;;  %1864 = vset.pattern.permute.xlu2 %v2037_v57 }
  0xab   : > { %v650_v27 = vsel %vm292_vm3, %v637_v25, 0  ;;  %839 = vperm.xlu2 %1864, %v2242_v40  }
  0xac   : > { %673 = vmatpush.bf16.msrb.mxu1 %v650_v27  ;;  %v699_v30 = vpop.permute.xlu1 %698 }
  0xad   : > { %v705_v33 = vsel %vm704_vm12, %v699_v30, %v701_v28 }
  0xae   : > { %v703_v31 = vpop.permute.xlu0 %702  ;;  %v711_v37 = vsel %vm292_vm3, %v705_v33, 0  ;;  %916 = vrot.lane.b32.xlu1 %v2025_v0, %s2026_s27 }
  0xaf   : > { %v706_v34 = vsel %vm704_vm12, %v701_v28, %v703_v31  ;;  %1602 = vmatmul.msk.bf16.vlgmr.msrb.gmra.mxu2 %vm288_vm4, %v1759_v29 }
  0xb0   : > { %v714_v38 = vsel %vm292_vm3, %v706_v34, 0  ;;  %1603 = vmatmul.msk.bf16.vlgmr.msrb.gmra.mxu3 %vm288_vm4, %v1759_v29  ;;  %723 = vmatpush.bf16.msrb.mxu2 %v711_v37 }
  0xb1   : > { %737 = vmatpush.bf16.msrb.mxu3 %v714_v38 }
  0xb4   : > { %1611 = vmatmul.msk.bf16.vlgmr.msra.gmra.mxu1 %vm288_vm4, %v1760_v36  ;;  %1610 = vmatmul.msk.bf16.vlgmr.msra.gmra.mxu0 %vm288_vm4, %v1760_v36  ;;  %v1857_v43 = vpop.permute.xlu1 %1856 }
  0xb5   : > { %v1859_v45 = vunpack.i.h.bf16 %v1857_v43  ;;  %v1858_v46 = vunpack.i.l.bf16 %v1857_v43 }
  0xb7   : > { %v755_v48 = vsel %vm754_vm13, %v1858_v46, %v1859_v45  ;;  %v756_v49 = vsel %vm754_vm13, %v1859_v45, %v753_v44 }
  0xb8   : > { %v760_v50 = vsel %vm2165_vm5, %v756_v49, 0.0  ;;  %v759_v51 = vsel %vm2147_vm1, %v755_v48, 0.0  ;;  %vm2380_vm1 = vmpackc.low %vm2174_vm8, %vm2174_vm8 }
  0xb9   : > { %v765_v52 = vpack.c.bf16 %v760_v50, %v760_v50  ;;  %v764_v53 = vpack.c.bf16 %v759_v51, %v759_v51 }
  0xbb   : > { %v778_v55 = vsel %vm292_vm3, %v765_v52, 0  ;;  %v775_v56 = vsel %vm292_vm3, %v764_v53, 0 }
  0xbc   : > { %801 = vmatpush.bf16.msra.mxu1 %v778_v55  ;;  %787 = vmatpush.bf16.msra.mxu0 %v775_v56 }
  0xbf   : > { %1618 = vmatmul.msk.bf16.vlgmr.msra.gmra.mxu2 %vm288_vm4, %v1761_v54 }
  0xc0   : > { %1619 = vmatmul.msk.bf16.vlgmr.msra.gmra.mxu3 %vm288_vm4, %v1761_v54 }
  0xc4   : > { %1627 = vmatmul.msk.bf16.vlgmr.msrb.gmra.mxu1 %vm288_vm4, %v1762_v58  ;;  %1626 = vmatmul.msk.bf16.vlgmr.msrb.gmra.mxu0 %vm288_vm4, %v1762_v58 }
  0xcf   : > { %1634 = vmatmul.msk.bf16.vlgmr.msrb.gmra.mxu2 %vm288_vm4, %v1763_v59 }
  0xd0   : > { %1635 = vmatmul.msk.bf16.vlgmr.msrb.gmra.mxu3 %vm288_vm4, %v1763_v59 }
  0xd4   : > { %1643 = vmatmul.msk.bf16.vlgmr.msra.gmra.mxu1 %vm288_vm4, %v1764_v60  ;;  %1642 = vmatmul.msk.bf16.vlgmr.msra.gmra.mxu0 %vm288_vm4, %v1764_v60 }
  0xfc   : > { %v828_v47 = vpop.permute.xlu2 %827 }
 0x10d   : > { %v815_v60 = vpop.permute.xlu0 %814 }
 0x111   : > { %v322_v61 = vpop.f32.mrf.mxu1  ;;  %v308_v62 = vpop.f32.mrf.mxu0 }
 0x119   : > { %v324_v63 = vpop.f32.mrf.mxu1  ;;  %v310_v1 = vpop.f32.mrf.mxu0 }
 0x121   : > { %v428_v2 = vpop.f32.mrf.mxu1  ;;  %v414_v3 = vpop.f32.mrf.mxu0 }
 0x122   : > { %v350_v4 = vpop.f32.mrf.mxu2 }
 0x123   : > { %v364_v6 = vpop.f32.mrf.mxu3  ;;  %v351_v22 = vadd.f32 %v350_v4, %v308_v62  ;;  %v840_v4 = vpop.permute.xlu2 %839 }
 0x124   : > { %v365_v23 = vadd.f32 %v364_v6, %v322_v61  ;;  %v820_v61 = vpop.permute.xlu1 %819 }
 0x125   : > { %v433_v26 = vadd.f32 %v414_v3, %v351_v22 }
 0x126   : > { %v434_v27 = vadd.f32 %v428_v2, %v365_v23 }
 0x129   : > { %v430_v7 = vpop.f32.mrf.mxu1  ;;  %v416_v8 = vpop.f32.mrf.mxu0 }
 0x12a   : > { %v352_v9 = vpop.f32.mrf.mxu2 }
 0x12b   : > { %v366_v10 = vpop.f32.mrf.mxu3  ;;  %v353_v33 = vadd.f32 %v352_v9, %v310_v1 }
 0x12c   : > { %v367_v34 = vadd.f32 %v366_v10, %v324_v63  ;;  %v832_v22 = vpop.permute.xlu1 %831 }
 0x12d   : > { %v435_v43 = vadd.f32 %v416_v8, %v353_v33 }
 0x12e   : > { %v436_v44 = vadd.f32 %v430_v7, %v367_v34 }
 0x131   : > { %v541_v11 = vpop.f32.mrf.mxu1  ;;  %v527_v12 = vpop.f32.mrf.mxu0 }
 0x132   : > { %v478_v13 = vpop.f32.mrf.mxu2 }
 0x133   : > { %v492_v14 = vpop.f32.mrf.mxu3  ;;  %v497_v28 = vadd.f32 %v478_v13, %v433_v26  ;;  %v844_v26 = vpop.permute.xlu0 %843 }
 0x134   : > { %v498_v29 = vadd.f32 %v492_v14, %v434_v27 }
 0x135   : > { %v546_v38 = vadd.f32 %v527_v12, %v497_v28 }
 0x136   : > { %v547_v42 = vadd.f32 %v541_v11, %v498_v29 }
 0x139   : > { %v543_v16 = vpop.f32.mrf.mxu1  ;;  %v529_v17 = vpop.f32.mrf.mxu0 }
 0x13a   : > { %v480_v18 = vpop.f32.mrf.mxu2 }
 0x13b   : > { %v494_v19 = vpop.f32.mrf.mxu3  ;;  %v499_v48 = vadd.f32 %v480_v18, %v435_v43 }
 0x13c   : > { %v500_v49 = vadd.f32 %v494_v19, %v436_v44 }
 0x13d   : > { %v548_v56 = vadd.f32 %v529_v17, %v499_v48 }
 0x13e   : > { %v549_v57 = vadd.f32 %v543_v16, %v500_v49  ;;  %v1766_v49 = vld [vmem:[%s2505_s2 + $0x8] sm:$0xff] }
 0x141   : > { %v675_v20 = vpop.f32.mrf.mxu1  ;;  %v661_v21 = vpop.f32.mrf.mxu0 }
 0x142   : > { %v597_v24 = vpop.f32.mrf.mxu2 }
 0x143   : > { %v611_v25 = vpop.f32.mrf.mxu3  ;;  %v616_v45 = vadd.f32 %v597_v24, %v546_v38 }
 0x144   : > { %v617_v46 = vadd.f32 %v611_v25, %v547_v42 }
 0x145   : > { %v680_v51 = vadd.f32 %v661_v21, %v616_v45 }
 0x146   : > { %v681_v53 = vadd.f32 %v675_v20, %v617_v46 }
 0x149   : > { %v677_v30 = vpop.f32.mrf.mxu1  ;;  %v663_v31 = vpop.f32.mrf.mxu0 }
 0x14a   : > { %v599_v36 = vpop.f32.mrf.mxu2 }
 0x14b   : > { %v613_v37 = vpop.f32.mrf.mxu3  ;;  %v618_v62 = vadd.f32 %v599_v36, %v548_v56 }
 0x14c   : > { %v619_v63 = vadd.f32 %v613_v37, %v549_v57 }
 0x14d   : > { %v682_v6 = vadd.f32 %v663_v31, %v618_v62 }
 0x14e   : > { %v683_v9 = vadd.f32 %v677_v30, %v619_v63 }
 0x151   : > { %v789_v50 = vpop.f32.mrf.mxu0  ;;  %v803_v52 = vpop.f32.mrf.mxu1 }
 0x152   : > { %v725_v54 = vpop.f32.mrf.mxu2 }
 0x153   : > { %v739_v55 = vpop.f32.mrf.mxu3  ;;  %v744_v58 = vadd.f32 %v725_v54, %v680_v51 }
 0x154   : > { %v745_v59 = vadd.f32 %v739_v55, %v681_v53 }
 0x155   : > { %v808_v2 = vadd.f32 %v789_v50, %v744_v58 }
 0x156   : > { %v809_v1 = vadd.f32 %v803_v52, %v745_v59 }
 0x157   : > { %v2287_v7 = vadd.f32 %v815_v60, %v808_v2 }
 0x158   : > { %v2285_v3 = vadd.f32 %v815_v60, %v809_v1 }
 0x159   : > { %v791_v10 = vpop.f32.mrf.mxu0  ;;  %v805_v17 = vpop.f32.mrf.mxu1  ;;  %v834_v18 = vmul.f32 %v828_v47, %v2287_v7 }
 0x15a   : > { %v835_v8 = vmul.f32 %v828_v47, %v2285_v3  ;;  %v727_v11 = vpop.f32.mrf.mxu2 }
 0x15b   : > { %v741_v12 = vpop.f32.mrf.mxu3  ;;  %v746_v14 = vadd.f32 %v727_v11, %v682_v6  ;;  %v846_v27 = vadd.f32 %v840_v4, %v834_v18  ;;  %v1767_v11 = vld [vmem:[%s2505_s2 + $0x10] sm:$0xff] }
 0x15c   : > { %v847_v13 = vadd.f32 %v840_v4, %v835_v8  ;;  %v747_v16 = vadd.f32 %v741_v12, %v683_v9 }
 0x15d   : > { %v810_v21 = vadd.f32 %v791_v10, %v746_v14  ;;  %v850_v33 = vmax.f32 %v846_v27, 0.0 }
 0x15e   : > { %v851_v19 = vmax.f32 %v847_v13, 0.0  ;;  %v811_v20 = vadd.f32 %v805_v17, %v747_v16 }
 0x15f   : > { %v2291_v23 = vadd.f32 %v820_v61, %v810_v21  ;;  %v1866_v43 = vpack.i.bf16 %v850_v33, %v2028_v5 }
 0x160   : > { %v2293_v24 = vadd.f32 %v820_v61, %v811_v20  ;;  %v1871_v25 = vpack.i.bf16 0.0, %v851_v19  ;;  %v1911_v46 = vpack.i.bf16 %v851_v19, %v850_v33 }
 0x161   : > { %v836_v28 = vmul.f32 %v832_v22, %v2291_v23 }
 0x162   : > { %v837_v29 = vmul.f32 %v832_v22, %v2293_v24  ;;  %1872 = vrot.lane.b32.xlu0 %v1871_v25, %s2029_s8 }
 0x163   : > { %v848_v30 = vadd.f32 %v844_v26, %v836_v28 }
 0x164   : > { %v849_v31 = vadd.f32 %v844_v26, %v837_v29 }
 0x165   : > { %v852_v34 = vmax.f32 %v848_v30, 0.0  ;;  %v1765_v30 = vld [vmem:[%s2505_s2] sm:$0xff] }
 0x166   : > { %v853_v36 = vmax.f32 %v849_v31, 0.0 }
 0x167   : > { %v2300_v38 = vpack.c.bf16 %v852_v34, %v850_v33  ;;  %v1916_v44 = vpack.i.bf16 %v852_v34, %v2028_v5  ;;  %v917_v5 = vpop.permute.xlu1 %916 }
 0x168   : > { %v2298_v37 = vpack.c.bf16 %v853_v36, %v851_v19  ;;  %v1876_v42 = vpack.i.bf16 %v853_v36, %v852_v34  ;;  %v1921_v45 = vpack.i.bf16 0.0, %v853_v36 }
 0x169   : > { %918 = vrot.lane.b32.xlu2 %v2300_v38, %s2026_s27 }
 0x16a   : > { %1887 = vrot.lane.b32.xlu0 %v1871_v25, %s2027_s7  ;;  %920 = vrot.lane.b32.xlu1 %v2298_v37, %s2026_s27 }
 0x171   : > { %1867 = vrot.lane.b32.xlu2 %v1866_v43, %s2029_s8 }
 0x172   : > { %1902 = vrot.lane.b32.xlu0 %v1871_v25, %s2030_s9  ;;  %1877 = vrot.lane.b32.xlu1 %v1876_v42, %s2029_s8 }
 0x179   : > { %1882 = vrot.lane.b32.xlu2 %v1866_v43, %s2027_s7 }
 0x17a   : > { %1917 = vrot.lane.b32.xlu0 %v1916_v44, %s2032_s11  ;;  %1892 = vrot.lane.b32.xlu1 %v1876_v42, %s2027_s7 }
 0x181   : > { %1897 = vrot.lane.b32.xlu2 %v1866_v43, %s2030_s9 }
 0x182   : > { %1932 = vrot.lane.b32.xlu0 %v1916_v44, %s2031_s10  ;;  %1907 = vrot.lane.b32.xlu1 %v1876_v42, %s2030_s9  ;;  %s188_s9 = sand.u32 1, %s2015_s16  }
 0x183   : > { %s1490_s5 = scalar_lea.sflag [#allocation4], %s188_s9 }
 0x189   : > { %1912 = vrot.lane.b32.xlu2 %v1911_v46, %s2032_s11 }
 0x18a   : > { %1947 = vrot.lane.b32.xlu0 %v1916_v44, %s2034_s13  ;;  %1922 = vrot.lane.b32.xlu1 %v1921_v45, %s2032_s11  ;;  %s1774_s11 = sshll.u32 %s2087_s19, 5 }
 0x18b   : > { %s1501_s29 = scalar_lea.hbm %s2507_s4, %s1774_s11 }
 0x18c   : > { %s1504_s19 = sshll.u32 %s1501_s29, 4  ;;  %s1505_s19 = int_to_ptr.hbm [resolvable:$true] %s1504_s19 }
 0x18d   : > { %s1975_s6 = sshra.s32 %s1505_s19, 4  ;;  %s1976_s6 = int_to_ptr.hbm [resolvable:$true] %s1975_s6 }
 0x18e   : > { %s1977_s14 = scalar_lea.hbm %s1976_s6, 32  ;;  %p1982_p0 = scmp.lt.s32.totalorder %s1976_s6, %s2507_s4 }
 0x18f   : > { %p1978_p11 = scmp.ne.s32.totalorder %s1976_s6, %s1977_s14  ;;  %p1983_p1 = scmp.lt.s32.totalorder %s1981_s23, %s1977_s14 }
 0x191   : > { %1927 = vrot.lane.b32.xlu2 %v1911_v46, %s2031_s10  ;;  %p1979_p12 = pnand %p1978_p11, %p2104_p5  ;;  %p1984_p2 = por %p1983_p1, %p1982_p0 }
 0x192   : > { %1341 = vrot.lane.b32.xlu0 %v2298_v37, %s2033_s12  ;;  %1937 = vrot.lane.b32.xlu1 %v1921_v45, %s2031_s10  ;;  %s1571_s10 = sshll.u32 %s188_s9, 5 }
 0x193   : > { %p1980_p13 = pneg %p1979_p12 }
 0x195   : > { %p1985_p3 = pnand %p1984_p2, %p1980_p13 }
 0x199   : > { %1942 = vrot.lane.b32.xlu2 %v1911_v46, %s2034_s13 }
 0x19a   : > { %1952 = vrot.lane.b32.xlu1 %v1921_v45, %s2034_s13 }
 0x1a1   : > { %1339 = vrot.lane.b32.xlu2 %v2300_v38, %s2033_s12 }
 0x1a2   : > { %1343 = vrot.lane.b32.xlu1 %v2025_v0, %s2033_s12  ;;  %s190_s12 = scalar_lea.vmem [#allocation3], %s1571_s10 }
 0x1a3   : > { %s1502_s30 = sshll.u32 %s190_s12, 4  ;;  %s1503_s30 = int_to_ptr.vmem [resolvable:$true] %s1502_s30 }
 0x1c3   : > { %v919_v47 = vpop.permute.xlu2 %918 }
 0x1c4   : > { %v922_v48 = vsel %vm285_vm2, %v917_v5, %v919_v47 }
 0x1c5   : > { %937 = vmatpush.bf16.msra.mxu2 %v922_v48 }
 0x1c8   : > { %1650 = vmatmul.msk.bf16.vlgmr.msra.gmra.mxu2 %vm285_vm2, %v1766_v49 }
 0x1cb   : > { %v1868_v50 = vpop.permute.xlu2 %1867 }
 0x1cc   : > { %v1870_v56 = vunpack.i.h.bf16 %v1868_v50  ;;  %v1869_v57 = vunpack.i.l.bf16 %v1868_v50 }
 0x1ce   : > { %v1006_v2 = vsel %vm379_vm0, %v1869_v57, %v1870_v56 }
 0x1d3   : > { %v1883_v52 = vpop.permute.xlu2 %1882 }
 0x1d4   : > { %v1873_v51 = vpop.permute.xlu0 %1872  ;;  %v1885_v12 = vunpack.i.h.bf16 %v1883_v52  ;;  %v1884_v13 = vunpack.i.l.bf16 %v1883_v52 }
 0x1d5   : > { %v1874_v58 = vunpack.i.l.bf16 %v1873_v51  ;;  %v1875_v61 = vunpack.i.h.bf16 %v1873_v51 }
 0x1d6   : > { %v886_v22 = vsel %vm254_vm7, %v1884_v13, %v1885_v12 }
 0x1d7   : > { %v1007_v4 = vsel %vm379_vm0, %v1870_v56, %v1874_v58 }
 0x1db   : > { %v1898_v55 = vpop.permute.xlu2 %1897 }
 0x1dc   : > { %v1888_v53 = vpop.permute.xlu0 %1887  ;;  %v921_v54 = vpop.permute.xlu1 %920  ;;  %v1900_v39 = vunpack.i.h.bf16 %v1898_v55  ;;  %v1899_v31 = vunpack.i.l.bf16 %v1898_v55 }
 0x1dd   : > { %v923_v0 = vsel %vm285_vm2, %v919_v47, %v921_v54  ;;  %v1889_v32 = vunpack.i.l.bf16 %v1888_v53  ;;  %v1890_v18 = vunpack.i.h.bf16 %v1888_v53 }
 0x1de   : > { %951 = vmatpush.bf16.msra.mxu3 %v923_v0  ;;  %v1075_v44 = vsel %vm443_vm10, %v1899_v31, %v1900_v39 }
 0x1df   : > { %v887_v25 = vsel %vm254_vm7, %v1885_v12, %v1889_v32  ;;  %v2038_v32 = vmov 4  }
 0x1e0   : > { %1958 = vset.pattern.permute.xlu1 %v2038_v32 }
 0x1e1   : > { %1651 = vmatmul.msk.bf16.vlgmr.msra.gmra.mxu3 %vm285_vm2, %v1766_v49  ;;  %v1769_v49 = vld [vmem:[%s2505_s2 + $0x20] sm:$0xff]  ;;  %1466 = vperm.xlu1 %1958, %v2242_v40  }
 0x1e3   : > { %v1913_v14 = vpop.permute.xlu2 %1912 }
 0x1e4   : > { %v1903_v59 = vpop.permute.xlu0 %1902  ;;  %v1878_v60 = vpop.permute.xlu1 %1877  ;;  %v1915_v50 = vunpack.i.h.bf16 %v1913_v14  ;;  %v1914_v51 = vunpack.i.l.bf16 %v1913_v14 }
 0x1e5   : > { %v1880_v62 = vunpack.i.h.bf16 %v1878_v60  ;;  %v1879_v63 = vunpack.i.l.bf16 %v1878_v60  ;;  %v1904_v33 = vunpack.i.l.bf16 %v1903_v59 }
 0x1e6   : > { %v1268_v57 = vsel %vm626_vm9, %v1914_v51, %v1915_v50 }
 0x1e7   : > { %v1008_v6 = vsel %vm379_vm0, %v1875_v61, %v1879_v63  ;;  %v1009_v8 = vsel %vm379_vm0, %v1879_v63, %v1880_v62  ;;  %vm2369_vm0 = vmpackc.low %vm2169_vm6, %vm2169_vm6  ;;  %v1076_v45 = vsel %vm443_vm10, %v1900_v39, %v1904_v33 }
 0x1e8   : > { %v1671_v15 = vpack.c.bf16 %v1008_v6, %v1006_v2  ;;  %v1675_v10 = vpack.c.bf16 %v1009_v8, %v1007_v4  ;;  %v1768_v2 = vld [vmem:[%s2505_s2 + $0x18] sm:$0xff] }
 0x1ea   : > { %1672 = vmatpush.bf16.msk.msrb.mxu2 %vm2341_vm14, %v1671_v15  ;;  %1676 = vmatpush.bf16.msk.msrb.mxu3 %vm2352_vm15, %v1675_v10 }
 0x1ec   : > { %v1918_v16 = vpop.permute.xlu0 %1917  ;;  %v1893_v17 = vpop.permute.xlu1 %1892 }
 0x1ed   : > { %v1895_v19 = vunpack.i.h.bf16 %v1893_v17  ;;  %v1894_v20 = vunpack.i.l.bf16 %v1893_v17  ;;  %1673 = vmatmul.msk.bf16.vlgmr.msrb.gmra.mxu2 %vm285_vm2, %v1767_v11  ;;  %v1919_v52 = vunpack.i.l.bf16 %v1918_v16  ;;  %v1920_v54 = vunpack.i.h.bf16 %v1918_v16 }
 0x1ee   : > { %1150 = vmatpush.bf16.msra.mxu2 %v2300_v38  ;;  %1164 = vmatpush.bf16.msra.mxu3 %v2298_v37  ;;  %v1905_v37 = vunpack.i.h.bf16 %v1903_v59  ;;  %v1928_v38 = vpop.permute.xlu2 %1927 }
 0x1ef   : > { %v888_v26 = vsel %vm254_vm7, %v1890_v18, %v1894_v20  ;;  %v889_v27 = vsel %vm254_vm7, %v1894_v20, %v1895_v19  ;;  %v1269_v58 = vsel %vm626_vm9, %v1915_v50, %v1919_v52  ;;  %v1930_v4 = vunpack.i.h.bf16 %v1928_v38 }
 0x1f0   : > { %v1657_v35 = vpack.c.bf16 %v888_v26, %v886_v22  ;;  %v1661_v29 = vpack.c.bf16 %v889_v27, %v887_v25  ;;  %v1929_v6 = vunpack.i.l.bf16 %v1928_v38  ;;  %v2039_v19 = vmov 3   ;;  %v1771_v25 = vld [vmem:[%s2505_s2 + $0x30] sm:$0xff] }
 0x1f1   : > { %1677 = vmatmul.msk.bf16.vlgmr.msrb.gmra.mxu3 %vm285_vm2, %v1767_v11  ;;  %1957 = vset.pattern.permute.xlu0 %v2039_v19 }
 0x1f2   : > { %1658 = vmatpush.bf16.msk.msrb.mxu0 %vm2369_vm0, %v1657_v35  ;;  %1662 = vmatpush.bf16.msk.msrb.mxu1 %vm2380_vm1, %v1661_v29  ;;  %v1199_v13 = vsel %vm562_vm11, %v1929_v6, %v1930_v4 }
 0x1f3   : > { %1458 = vperm.xlu0 %1957, %v2247_v41   ;;  %1956 = vset.pattern.permute.xlu2 %v2039_v19 }
 0x1f4   : > { %v1933_v34 = vpop.permute.xlu0 %1932  ;;  %v1908_v36 = vpop.permute.xlu1 %1907  ;;  %1454 = vperm.xlu2 %1956, %v2242_v40  }
 0x1f5   : > { %v1910_v42 = vunpack.i.h.bf16 %v1908_v36  ;;  %v1909_v43 = vunpack.i.l.bf16 %v1908_v36  ;;  %1659 = vmatmul.msk.bf16.vlgmr.msrb.gmra.mxu0 %vm285_vm2, %v1765_v30  ;;  %1663 = vmatmul.msk.bf16.vlgmr.msrb.gmra.mxu1 %vm285_vm2, %v1765_v30  ;;  %v1934_v8 = vunpack.i.l.bf16 %v1933_v34  ;;  %v1935_v10 = vunpack.i.h.bf16 %v1933_v34 }
 0x1f6   : > { %v1943_v59 = vpop.permute.xlu2 %1942 }
 0x1f7   : > { %v1077_v46 = vsel %vm443_vm10, %v1905_v37, %v1909_v43  ;;  %v1078_v5 = vsel %vm443_vm10, %v1909_v43, %v1910_v42  ;;  %v1200_v14 = vsel %vm562_vm11, %v1930_v4, %v1934_v8  ;;  %v1945_v27 = vunpack.i.h.bf16 %v1943_v59  ;;  %v1770_v42 = vld [vmem:[%s2505_s2 + $0x28] sm:$0xff] }
 0x1f8   : > { %v1685_v47 = vpack.c.bf16 %v1077_v46, %v1075_v44  ;;  %v1689_v48 = vpack.c.bf16 %v1078_v5, %v1076_v45  ;;  %v1944_v28 = vunpack.i.l.bf16 %v1943_v59  ;;  %v1773_v45 = vld [vmem:[%s2505_s2 + $0x40] sm:$0xff] }
 0x1fa   : > { %1686 = vmatpush.bf16.msk.msra.mxu0 %vm2369_vm0, %v1685_v47  ;;  %1690 = vmatpush.bf16.msk.msra.mxu1 %vm2380_vm1, %v1689_v48  ;;  %v1396_v40 = vsel %vm754_vm13, %v1944_v28, %v1945_v27 }
 0x1fb   : > { %1960 = vset.pattern.permute.xlu0 %v2038_v32 }
 0x1fc   : > { %v1923_v53 = vpop.permute.xlu1 %1922  ;;  %v1948_v0 = vpop.permute.xlu0 %1947  ;;  %1959 = vset.pattern.permute.xlu2 %v2038_v32 }
 0x1fd   : > { %v1925_v55 = vunpack.i.h.bf16 %v1923_v53  ;;  %v1924_v56 = vunpack.i.l.bf16 %v1923_v53  ;;  %1698 = vmatmul.msk.bf16.vlgmr.msra.gmra.mxu2 %vm285_vm2, %v1769_v49  ;;  %v1949_v35 = vunpack.i.l.bf16 %v1948_v0  ;;  %v1950_v30 = vunpack.i.h.bf16 %v1948_v0  ;;  %1470 = vperm.xlu2 %1959, %v2247_v41   ;;  %v1772_v41 = vld [vmem:[%s2505_s2 + $0x38] sm:$0xff] }
 0x1fe   : > { %v1340_v22 = vpop.permute.xlu2 %1339 }
 0x1ff   : > { %v1270_v60 = vsel %vm626_vm9, %v1920_v54, %v1924_v56  ;;  %v1271_v61 = vsel %vm626_vm9, %v1924_v56, %v1925_v55  ;;  %v1397_v33 = vsel %vm754_vm13, %v1945_v27, %v1949_v35 }
 0x200   : > { %v1721_v62 = vpack.c.bf16 %v1270_v60, %v1268_v57  ;;  %v1725_v63 = vpack.c.bf16 %v1271_v61, %v1269_v58 }
 0x201   : > { %1699 = vmatmul.msk.bf16.vlgmr.msra.gmra.mxu3 %vm285_vm2, %v1769_v49 }
 0x202   : > { %1722 = vmatpush.bf16.msk.msrb.mxu2 %vm2369_vm0, %v1721_v62  ;;  %1726 = vmatpush.bf16.msk.msrb.mxu3 %vm2380_vm1, %v1725_v63 }
 0x204   : > { %v1938_v15 = vpop.permute.xlu1 %1937  ;;  %v1342_v16 = vpop.permute.xlu0 %1341 }
 0x205   : > { %v1940_v11 = vunpack.i.h.bf16 %v1938_v15  ;;  %v1939_v12 = vunpack.i.l.bf16 %v1938_v15  ;;  %1687 = vmatmul.msk.bf16.vlgmr.msra.gmra.mxu0 %vm285_vm2, %v1768_v2  ;;  %1691 = vmatmul.msk.bf16.vlgmr.msra.gmra.mxu1 %vm285_vm2, %v1768_v2  ;;  %v1345_v26 = vsel %vm704_vm12, %v1340_v22, %v1342_v16 }
 0x207   : > { %v1201_v17 = vsel %vm562_vm11, %v1935_v10, %v1939_v12  ;;  %v1202_v18 = vsel %vm562_vm11, %v1939_v12, %v1940_v11 }
 0x208   : > { %v1707_v20 = vpack.c.bf16 %v1201_v17, %v1199_v13  ;;  %v1711_v21 = vpack.c.bf16 %v1202_v18, %v1200_v14 }
 0x20a   : > { %1708 = vmatpush.bf16.msk.msrb.mxu0 %vm2341_vm14, %v1707_v20  ;;  %1712 = vmatpush.bf16.msk.msrb.mxu1 %vm2352_vm15, %v1711_v21 }
 0x20c   : > { %v1953_v29 = vpop.permute.xlu1 %1952 }
 0x20d   : > { %v1955_v39 = vunpack.i.h.bf16 %v1953_v29  ;;  %v1954_v31 = vunpack.i.l.bf16 %v1953_v29  ;;  %1723 = vmatmul.msk.bf16.vlgmr.msrb.gmra.mxu2 %vm285_vm2, %v1771_v25 }
 0x20e   : > { %1359 = vmatpush.bf16.msra.mxu0 %v1345_v26 }
 0x20f   : > { %v1398_v34 = vsel %vm754_vm13, %v1950_v30, %v1954_v31  ;;  %v1399_v36 = vsel %vm754_vm13, %v1954_v31, %v1955_v39 }
 0x210   : > { %v1743_v37 = vpack.c.bf16 %v1398_v34, %v1396_v40  ;;  %v1747_v38 = vpack.c.bf16 %v1399_v36, %v1397_v33 }
 0x211   : > { %1727 = vmatmul.msk.bf16.vlgmr.msrb.gmra.mxu3 %vm285_vm2, %v1771_v25 }
 0x212   : > { %1744 = vmatpush.bf16.msk.msra.mxu2 %vm2341_vm14, %v1743_v37  ;;  %1748 = vmatpush.bf16.msk.msra.mxu3 %vm2352_vm15, %v1747_v38 }
 0x214   : > { %v1344_v43 = vpop.permute.xlu1 %1343 }
 0x215   : > { %v1346_v44 = vsel %vm704_vm12, %v1342_v16, %v1344_v43  ;;  %1709 = vmatmul.msk.bf16.vlgmr.msrb.gmra.mxu0 %vm285_vm2, %v1770_v42  ;;  %1713 = vmatmul.msk.bf16.vlgmr.msrb.gmra.mxu1 %vm285_vm2, %v1770_v42 }
 0x216   : > { %1373 = vmatpush.bf16.msra.mxu1 %v1346_v44 }
 0x21d   : > { %1745 = vmatmul.msk.bf16.vlgmr.msra.gmra.mxu2 %vm285_vm2, %v1773_v45 }
 0x221   : > { %1749 = vmatmul.msk.bf16.vlgmr.msra.gmra.mxu3 %vm285_vm2, %v1773_v45 }
 0x225   : > { %1734 = vmatmul.msk.bf16.vlgmr.msra.gmra.mxu0 %vm285_vm2, %v1772_v41  ;;  %1735 = vmatmul.msk.bf16.vlgmr.msra.gmra.mxu1 %vm285_vm2, %v1772_v41 }
 0x24b   : > { %v939_v1 = vpop.f32.mrf.mxu2 }
 0x24e   : > { %v1455_v38 = vpop.permute.xlu2 %1454 }
 0x253   : > { %v941_v46 = vpop.f32.mrf.mxu2  ;;  %v1467_v41 = vpop.permute.xlu1 %1466 }
 0x264   : > { %v953_v9 = vpop.f32.mrf.mxu3 }
 0x26c   : > { %v955_v5 = vpop.f32.mrf.mxu3 }
 0x270   : > { %v1040_v47 = vpop.f32.mrf.mxu2 }
 0x272   : > { %v975_v48 = vpop.f32.mrf.mxu0  ;;  %v989_v49 = vpop.f32.mrf.mxu1 }
 0x273   : > { %v976_v63 = vadd.f32 %v975_v48, %v939_v1  ;;  %v990_v2 = vadd.f32 %v989_v49, %v953_v9 }
 0x274   : > { %v1054_v50 = vpop.f32.mrf.mxu3 }
 0x275   : > { %v1059_v15 = vadd.f32 %v1040_v47, %v976_v63  ;;  %v1060_v10 = vadd.f32 %v1054_v50, %v990_v2 }
 0x278   : > { %v1042_v51 = vpop.f32.mrf.mxu2 }
 0x27a   : > { %v977_v52 = vpop.f32.mrf.mxu0  ;;  %v991_v53 = vpop.f32.mrf.mxu1 }
 0x27b   : > { %v978_v32 = vadd.f32 %v977_v52, %v941_v46  ;;  %v992_v14 = vadd.f32 %v991_v53, %v955_v5 }
 0x27c   : > { %v1056_v54 = vpop.f32.mrf.mxu3 }
 0x27d   : > { %v1061_v21 = vadd.f32 %v1042_v51, %v978_v32  ;;  %v1062_v22 = vadd.f32 %v1056_v54, %v992_v14 }
 0x280   : > { %v1152_v0 = vpop.f32.mrf.mxu2 }
 0x282   : > { %v1109_v55 = vpop.f32.mrf.mxu0  ;;  %v1123_v56 = vpop.f32.mrf.mxu1 }
 0x283   : > { %v1128_v11 = vadd.f32 %v1109_v55, %v1059_v15  ;;  %v1129_v12 = vadd.f32 %v1123_v56, %v1060_v10 }
 0x284   : > { %v1166_v57 = vpop.f32.mrf.mxu3 }
 0x285   : > { %v1171_v18 = vadd.f32 %v1152_v0, %v1128_v11  ;;  %v1172_v19 = vadd.f32 %v1166_v57, %v1129_v12  ;;  %v1459_v0 = vpop.permute.xlu0 %1458 }
 0x288   : > { %v1154_v58 = vpop.f32.mrf.mxu2 }
 0x28a   : > { %v1111_v59 = vpop.f32.mrf.mxu0  ;;  %v1125_v60 = vpop.f32.mrf.mxu1 }
 0x28b   : > { %v1130_v27 = vadd.f32 %v1111_v59, %v1061_v21  ;;  %v1131_v28 = vadd.f32 %v1125_v60, %v1062_v22 }
 0x28c   : > { %v1168_v61 = vpop.f32.mrf.mxu3 }
 0x28d   : > { %v1173_v40 = vadd.f32 %v1154_v58, %v1130_v27  ;;  %v1174_v33 = vadd.f32 %v1168_v61, %v1131_v28  ;;  %v1471_v61 = vpop.permute.xlu2 %1470 }
 0x290   : > { %v1302_v62 = vpop.f32.mrf.mxu2 }
 0x292   : > { %v1233_v4 = vpop.f32.mrf.mxu0  ;;  %v1247_v6 = vpop.f32.mrf.mxu1 }
 0x293   : > { %v1252_v25 = vadd.f32 %v1233_v4, %v1171_v18  ;;  %v1253_v26 = vadd.f32 %v1247_v6, %v1172_v19 }
 0x294   : > { %v1316_v8 = vpop.f32.mrf.mxu3 }
 0x295   : > { %v1321_v35 = vadd.f32 %v1302_v62, %v1252_v25  ;;  %v1322_v29 = vadd.f32 %v1316_v8, %v1253_v26 }
 0x298   : > { %v1304_v13 = vpop.f32.mrf.mxu2 }
 0x29a   : > { %v1235_v16 = vpop.f32.mrf.mxu0  ;;  %v1249_v17 = vpop.f32.mrf.mxu1 }
 0x29b   : > { %v1254_v42 = vadd.f32 %v1235_v16, %v1173_v40  ;;  %v1255_v43 = vadd.f32 %v1249_v17, %v1174_v33 }
 0x29c   : > { %v1318_v20 = vpop.f32.mrf.mxu3 }
 0x29d   : > { %v1323_v46 = vadd.f32 %v1304_v13, %v1254_v42  ;;  %v1324_v5 = vadd.f32 %v1318_v20, %v1255_v43 }
 0x2a0   : > { %v1430_v30 = vpop.f32.mrf.mxu2 }
 0x2a2   : > { %v1361_v39 = vpop.f32.mrf.mxu0  ;;  %v1375_v31 = vpop.f32.mrf.mxu1 }
 0x2a3   : > { %v1380_v34 = vadd.f32 %v1361_v39, %v1321_v35  ;;  %v1381_v36 = vadd.f32 %v1375_v31, %v1322_v29 }
 0x2a4   : > { %v1444_v37 = vpop.f32.mrf.mxu3 }
 0x2a5   : > { %v1449_v44 = vadd.f32 %v1430_v30, %v1380_v34  ;;  %v1450_v45 = vadd.f32 %v1444_v37, %v1381_v36 }
 0x2a7   : > { %v1461_v1 = vmul.f32 %v1455_v38, %v1449_v44  ;;  %v1462_v9 = vmul.f32 %v1455_v38, %v1450_v45 }
 0x2a8   : > { %v1432_v55 = vpop.f32.mrf.mxu2 }
 0x2a9   : > { %v1473_v47 = vadd.f32 %v1467_v41, %v1461_v1  ;;  %v1474_v48 = vadd.f32 %v1467_v41, %v1462_v9 }
 0x2aa   : > { %v1363_v49 = vpop.f32.mrf.mxu0  ;;  %v1377_v50 = vpop.f32.mrf.mxu1 }
 0x2ab   : > { %v1477_v51 = vadd.f32 %v1473_v47, %v2287_v7  ;;  %v1478_v52 = vadd.f32 %v1474_v48, %v2285_v3  ;;  %v1382_v53 = vadd.f32 %v1363_v49, %v1323_v46  ;;  %v1383_v54 = vadd.f32 %v1377_v50, %v1324_v5 }
 0x2ac   : > { %v1446_v56 = vpop.f32.mrf.mxu3 }
 0x2ad   : > { %v1481_v57 = vmax.f32 %v1477_v51, 0.0  ;;  %v1482_v58 = vmax.f32 %v1478_v52, 0.0  ;;  %v1451_v59 = vadd.f32 %v1432_v55, %v1382_v53  ;;  %v1452_v60 = vadd.f32 %v1446_v56, %v1383_v54 }
 0x2af   : > { %1485 = vst [vmem:[%s190_s12] sm:$0xff] %v1481_v57  ;;  %v1463_v62 = vmul.f32 %v1459_v0, %v1451_v59  ;;  %v1464_v63 = vmul.f32 %v1459_v0, %v1452_v60 }
 0x2b0   : > { %1486 = vst [vmem:[%s190_s12 + $0x8] sm:$0xff] %v1482_v58 }
 0x2b1   : > { %v1475_v3 = vadd.f32 %v1471_v61, %v1463_v62  ;;  %v1476_v7 = vadd.f32 %v1471_v61, %v1464_v63 }
 0x2b3   : > { %v1479_v2 = vadd.f32 %v1475_v3, %v2291_v23  ;;  %v1480_v4 = vadd.f32 %v1476_v7, %v2293_v24 }
 0x2b5   : > { %v1483_v6 = vmax.f32 %v1479_v2, 0.0  ;;  %v1484_v8 = vmax.f32 %v1480_v4, 0.0 }
 0x2b7   : > { %1487 = vst [vmem:[%s190_s12 + $0x10] sm:$0xff] %v1483_v6 }
 0x2b8   : > { %1488 = vst [vmem:[%s190_s12 + $0x18] sm:$0xff] %v1484_v8 }
 0x2b9   : > { %1988 = shalt.err (!%p1985_p3)
}
 0x2ba   : > { %s2040_s9 = smov 256  }
 0x2bb   : > { %1775 = dma.vmem_to_hbm [thread:$0]  (%p2104_p5), %s1503_s30, 512, %s1505_s19, %s1490_s5, %s2040_s9, %s2040_s9, %s2026_s27  }
 0x2bc PF: > { %p1781_p4 = scmp.ge.s32.totalorder %s2023_s18, 2  ;;  %s1519_s10 = sand.u32 1, %s2011_s15  }
 0x2bd   : > { %s1520_s11 = scalar_lea.sflag [#allocation4], %s1519_s10 }
 0x2be   : > { %p1778_p7 = pnand %p1781_p4, %p2108_p6 }
 0x2c0   : > { %p1779_p8 = pneg %p1778_p7 }
 0x2c2   : > { %2006 = dma.done.wait (%p1779_p8), %s1520_s11, 512  }
 0x2c3   : > { %2008 = vsyncadd (%p1779_p8), %s1520_s11, 4294966784  ;;  %p14_p9 = scmp.ge.s32.totalorder %s2091_s21, 4   ;;  %s2526_s15 = smov %s2015_s16 }
 0x2c4   : > { %s2527_s16 = smov %s2019_s17  ;;  %s2528_s17 = smov %s2102_s24 }
 0x2c5   : > { %s2529_s18 = smov %s2091_s21  ;;  %16 = sbr.rel (!%p14_p9) target bundleno = 3 (0x3), region = 87 }
 0x2ca   :  { %1526 = vsyncpa [#allocation4], 1 }
 0x2cb   :  { %1528 = vsyncpa [#allocation4 + $0x1], 1 }

</bundles_post_ra>
